<compile_context>
chip_gen: v6e
topology: v6e:2x2x1
jax: 0.10.0
libtpu: 0.0.40
codegen_flags: <defaults>
</compile_context>

<pallas_src>
import functools

import jax
import jax.numpy as jnp
from jax.experimental import pallas as pl
from jax.experimental.pallas import tpu as pltpu


def _vmem_limit(block_bytes, floor=16 << 20, cap=60 << 20):
    """Per-kernel VMEM limit derived from the per-step block bytes (v7x-safe cap)."""
    return int(max(floor, min(2 * block_bytes + (8 << 20), cap)))


@functools.partial(jax.jit, static_argnames=("eps",))
def basic_convolution_block(x, weight, gamma, beta, eps=1e-5):
    """Forward pass of BasicConvolutionBlock(inc, outc, ks=3, stride=1, dilation=1).

    x:      (N, C, D, H, W) float32   dense voxel grid (NCDHW)
    weight: (27, C, OUTC)   float32   conv kernel, taps ordered (kd, kh, kw)
    gamma:  (OUTC,)         float32   BatchNorm weight
    beta:   (OUTC,)         float32   BatchNorm bias
    returns (N, OUTC, D, H, W) float32
    """
    N, C, D, H, W = x.shape
    K3, Cw, outc = weight.shape
    assert K3 == 27 and Cw == C

    Wp = W + 2                               # padded width
    S = (H + 2) * Wp                         # rows of one padded depth slice
    L = (H - 1) * Wp + W                     # rows actually accumulated per slice
    R = N * (D + 2)                          # (sample, padded-depth) output slices
    outc_pad = pl.cdiv(outc, 128) * 128      # lane-dense conv channels (256 for 128<outc<=256)

    # ---- glue: channels-last bf16, spatially padded, depth-flattened input ----
    xl = jnp.transpose(x, (0, 2, 3, 4, 1)).astype(jnp.bfloat16)      # (N, D, H, W, C)
    xp = jnp.pad(xl, ((0, 0), (1, 1), (1, 1), (1, 1), (0, 0)))       # (N, D+2, H+2, W+2, C)
    xpf = xp.reshape(R, S, C)
    xpf = jnp.pad(xpf, ((1, 1), (0, 0), (0, 0)))                     # guard slice each end

    # weight (27, C, outc) taps ordered (kd, kh, kw) -> (3, 9*C, outc_pad) bf16 so each
    # depth tap is a single deep matmul against the lane-concatenated 9-tap patch.
    w = jnp.pad(weight, ((0, 0), (0, 0), (0, outc_pad - outc)))
    w = w.reshape(3, 9 * C, outc_pad).astype(jnp.bfloat16)

    # -------- kernel 1: conv (3 packed MXU matmuls/slice) + masked per-slice BN stats ----
    def conv_stats_kernel(x0_ref, x1_ref, x2_ref, w_ref, out_ref, sum_ref, ssq_ref):
        acc = jnp.zeros((L, outc_pad), jnp.float32)
        for kd, slab_ref in enumerate((x0_ref, x1_ref, x2_ref)):
            s = slab_ref[0]                                          # (S, C) bf16, no upcast
            # Lane-concatenate the nine in-plane taps -> (L, 9C) bf16 patch.
            patch = jnp.concatenate(
                [s[kh * Wp + kw:kh * Wp + kw + L, :]
                 for kh in range(3) for kw in range(3)], axis=-1)
            acc += jnp.dot(patch, w_ref[kd], preferred_element_type=jnp.float32)

        # Direct partial store (no concatenate-with-zeros full-tile copy).
        out_ref[0, :L, :] = acc.astype(out_ref.dtype)
        # Zero the only extra rows kernel 2 will read (rows [L, H*Wp) -> Wp-W == 2 rows);
        # rows beyond H*Wp are never read again, so they may stay stale.
        out_ref[0, L:H * Wp, :] = jnp.zeros((H * Wp - L, outc_pad), out_ref.dtype)

        # BatchNorm partials from the f32 accumulator: mask padded width columns and
        # the two padded depth slices of this sample.
        col = jax.lax.broadcasted_iota(jnp.int32, (L, 1), 0) % Wp
        pd = pl.program_id(0) % (D + 2)
        valid = jnp.logical_and(col < W, jnp.logical_and(pd >= 1, pd <= D))
        m = valid.astype(jnp.float32)
        masked = acc * m
        sum_ref[0] = masked.sum(axis=0, keepdims=True)
        ssq_ref[0] = (masked * acc).sum(axis=0, keepdims=True)

    k1_block_bytes = (
        3 * 2 * S * C * 2              # three depth slabs, double-buffered, bf16
        + 2 * 27 * C * outc_pad * 2    # resident weight (2 buffers reserved by default)
        + 2 * S * outc_pad * 2         # bf16 conv output block, double-buffered
        + 2 * 2 * 2 * outc_pad * 4     # per-slice BN partial-sum blocks
        + L * 9 * C * 2                # lane-concatenated patch temporary
        + 2 * L * outc_pad * 4         # f32 accumulator (+ headroom)
    )

    conv_full, sums, ssqs = pl.pallas_call(
        conv_stats_kernel,
        out_shape=(
            jax.ShapeDtypeStruct((R, S, outc_pad), jnp.bfloat16),    # bf16: halves HBM passes
            jax.ShapeDtypeStruct((R, 1, outc_pad), jnp.float32),
            jax.ShapeDtypeStruct((R, 1, outc_pad), jnp.float32),
        ),
        grid=(R,),
        in_specs=[
            pl.BlockSpec((1, S, C), lambda r: (r, 0, 0)),
            pl.BlockSpec((1, S, C), lambda r: (r + 1, 0, 0)),
            pl.BlockSpec((1, S, C), lambda r: (r + 2, 0, 0)),
            # Constant index_map -> fetched once.  TODO(synk): single-buffer this small
            # resident weight (pl.Buffered(1)) to reclaim 27*C*outc_pad*2 B on v7x.
            pl.BlockSpec((3, 9 * C, outc_pad), lambda r: (0, 0, 0)),
        ],
        out_specs=(
            pl.BlockSpec((1, S, outc_pad), lambda r: (r, 0, 0)),
            pl.BlockSpec((1, 1, outc_pad), lambda r: (r, 0, 0)),
            pl.BlockSpec((1, 1, outc_pad), lambda r: (r, 0, 0)),
        ),
        compiler_params=pltpu.CompilerParams(
            dimension_semantics=("parallel",),
            vmem_limit_bytes=_vmem_limit(k1_block_bytes)),
    )(xpf, xpf, xpf, w)
    # TODO(synk): a manual rolling depth-slab buffer (pl.ANY + make_async_copy) would cut
    # input HBM reads ~3x, but serializes the grid; input traffic is minor vs conv_full.

    # ---- glue: fold batch statistics + BN params into per-channel scale/shift ----
    P = N * D * H * W
    sum_c = sums.sum(axis=(0, 1))
    ssq_c = ssqs.sum(axis=(0, 1))
    mean = sum_c / P
    var = jnp.maximum(ssq_c / P - mean * mean, 0.0)      # biased variance (training BN)
    gamma_p = jnp.pad(gamma, (0, outc_pad - outc))
    beta_p = jnp.pad(beta, (0, outc_pad - outc))
    inv_std = jax.lax.rsqrt(var + eps)
    scale = (gamma_p * inv_std).reshape(1, 1, outc_pad)
    shift = (beta_p - mean * gamma_p * inv_std).reshape(1, 1, outc_pad)

    # -------- kernel 2: fused BN affine + ReLU over valid slices only, cropped store ----
    conv4 = conv_full.reshape(R, H + 2, Wp, outc_pad)    # free, layout-preserving reshape

    def bn_relu_kernel(x_ref, scale_ref, shift_ref, o_ref):
        xv = x_ref[0].astype(jnp.float32)                           # (H, Wp, outc_pad)
        y = jnp.maximum(xv * scale_ref[...] + shift_ref[...], 0.0)
        o_ref[0, 0] = y[:, :W, :outc]                               # crop pad before store

    k2_block_bytes = (
        2 * H * Wp * outc_pad * 2      # bf16 input block, double-buffered
        + 2 * 2 * outc_pad * 4         # scale / shift
        + 2 * H * W * outc * 4         # f32 output block, double-buffered
        + 2 * H * Wp * outc_pad * 4    # in-kernel f32 temporaries
    )

    bn = pl.pallas_call(
        bn_relu_kernel,
        out_shape=jax.ShapeDtypeStruct((N, D, H, W, outc), jnp.float32),
        grid=(N, D),
        in_specs=[
            pl.BlockSpec((1, H, Wp, outc_pad),
                         lambda n, d: (n * (D + 2) + 1 + d, 0, 0, 0)),  # valid slices only
            pl.BlockSpec((1, 1, outc_pad), lambda n, d: (0, 0, 0)),
            pl.BlockSpec((1, 1, outc_pad), lambda n, d: (0, 0, 0)),
        ],
        out_specs=pl.BlockSpec((1, 1, H, W, outc), lambda n, d: (n, d, 0, 0, 0)),
        compiler_params=pltpu.CompilerParams(
            dimension_semantics=("parallel", "parallel"),
            vmem_limit_bytes=_vmem_limit(k2_block_bytes)),
    )(conv4, scale, shift)

    # ---- glue: only the compact valid tensor is transposed to NCDHW ----
    return jnp.transpose(bn, (0, 4, 1, 2, 3))


def _reference(x, weight, gamma, beta, eps=1e-5):
    """Pure-JAX reference (dense 3x3x3 'same' conv, no bias; training-mode BN; ReLU).

    Mirrors the kernel's precision policy (bf16 inputs/weights, f32 accumulation and
    statistics, bf16 storage of the conv result before the BN affine) so the comparison
    is apples-to-apples.
    """
    N, C, D, H, W = x.shape
    outc = weight.shape[-1]
    xb = x.astype(jnp.bfloat16).astype(jnp.float32)
    wb = weight.astype(jnp.bfloat16).astype(jnp.float32)
    xl = jnp.transpose(xb, (0, 2, 3, 4, 1))
    xp = jnp.pad(xl, ((0, 0), (1, 1), (1, 1), (1, 1), (0, 0)))
    conv = jnp.zeros((N, D, H, W, outc), jnp.float32)
    k = 0
    for kd in range(3):
        for kh in range(3):
            for kw in range(3):
                conv = conv + jnp.einsum(
                    "ndhwc,co->ndhwo",
                    xp[:, kd:kd + D, kh:kh + H, kw:kw + W, :], wb[k])
                k += 1
    mean = conv.mean(axis=(0, 1, 2, 3))
    var = conv.var(axis=(0, 1, 2, 3))
    conv_q = conv.astype(jnp.bfloat16).astype(jnp.float32)   # mirrors bf16 conv_full storage
    y = (conv_q - mean) * jax.lax.rsqrt(var + eps) * gamma + beta
    y = jnp.maximum(y, 0.0)
    return jnp.transpose(y, (0, 4, 1, 2, 3))


if __name__ == "__main__":
    key = jax.random.PRNGKey(0)
    N, INC, OUTC, D, H, W = 2, 4, 8, 8, 8, 8

    k_x, k_w, k_g, k_b = jax.random.split(key, 4)
    x = jax.random.normal(k_x, (N, INC, D, H, W), dtype=jnp.float32)

    # spnn.Conv3d weight shape is (ks^3, inc, outc); deterministic init.
    fan_in = 27 * INC
    weight = jax.random.normal(k_w, (27, INC, OUTC), dtype=jnp.float32) / jnp.sqrt(fan_in)

    # spnn.BatchNorm affine params (perturbed from the 1/0 defaults to exercise them).
    gamma = 1.0 + 0.1 * jax.random.normal(k_g, (OUTC,), dtype=jnp.float32)
    beta = 0.1 * jax.random.normal(k_b, (OUTC,), dtype=jnp.float32)

    out = basic_convolution_block(x, weight, gamma, beta)
    jax.block_until_ready(out)
    assert out.shape == (N, OUTC, D, H, W)
    assert bool(jnp.all(out >= 0.0))  # ReLU

    ref = _reference(x, weight, gamma, beta)
    err = float(jnp.max(jnp.abs(out - ref)))
    assert jnp.allclose(out, ref, rtol=5e-3, atol=5e-3), f"max abs err {err}"
    print("KERNEL_OK")
</pallas_src>

<mosaic_0001>
module attributes {stable_mosaic.version = 11 : i64} {
  func.func @conv_stats_kernel(%arg0: i32, %arg1: memref<1x100x4xbf16, #tpu.memory_space<vmem>>, %arg2: memref<1x100x4xbf16, #tpu.memory_space<vmem>>, %arg3: memref<1x100x4xbf16, #tpu.memory_space<vmem>>, %arg4: memref<3x36x128xbf16, #tpu.memory_space<vmem>>, %arg5: memref<1x100x128xbf16, #tpu.memory_space<vmem>>, %arg6: memref<1x1x128xf32, #tpu.memory_space<vmem>>, %arg7: memref<1x1x128xf32, #tpu.memory_space<vmem>>) attributes {dimension_semantics = [#tpu.dimension_semantics<parallel>], iteration_bounds = array<i64: 20>, scalar_prefetch = 0 : i64, scratch_operands = 0 : i64, tpu.core_type = #tpu.core_type<tc>, window_params = [{transform_indices = @transform_0, window_bounds = array<i64: 1, 100, 4>}, {transform_indices = @transform_1, window_bounds = array<i64: 1, 100, 4>}, {transform_indices = @transform_2, window_bounds = array<i64: 1, 100, 4>}, {pipeline_mode = #tpu.pipeline_mode<synchronous>, transform_indices = @transform_3, window_bounds = array<i64: 3, 36, 128>}, {transform_indices = @transform_4, window_bounds = array<i64: 1, 100, 128>}, {transform_indices = @transform_5, window_bounds = array<i64: 1, 1, 128>}, {transform_indices = @transform_6, window_bounds = array<i64: 1, 1, 128>}]} {
    %cst = arith.constant 0.000000e+00 : f32
    %0 = vector.broadcast %cst : f32 to vector<78x128xf32>
    %c0 = arith.constant 0 : index
    %c0_0 = arith.constant 0 : index
    %c0_1 = arith.constant 0 : index
    %1 = vector.load %arg1[%c0, %c0_0, %c0_1] : memref<1x100x4xbf16, #tpu.memory_space<vmem>>, vector<1x100x4xbf16>
    %2 = vector.shape_cast %1 : vector<1x100x4xbf16> to vector<100x4xbf16>
    %3 = vector.extract_strided_slice %2 {offsets = [0, 0], sizes = [78, 4], strides = [1, 1]} : vector<100x4xbf16> to vector<78x4xbf16>
    %4 = vector.extract_strided_slice %2 {offsets = [1, 0], sizes = [78, 4], strides = [1, 1]} : vector<100x4xbf16> to vector<78x4xbf16>
    %5 = vector.extract_strided_slice %2 {offsets = [2, 0], sizes = [78, 4], strides = [1, 1]} : vector<100x4xbf16> to vector<78x4xbf16>
    %6 = vector.extract_strided_slice %2 {offsets = [10, 0], sizes = [78, 4], strides = [1, 1]} : vector<100x4xbf16> to vector<78x4xbf16>
    %7 = vector.extract_strided_slice %2 {offsets = [11, 0], sizes = [78, 4], strides = [1, 1]} : vector<100x4xbf16> to vector<78x4xbf16>
    %8 = vector.extract_strided_slice %2 {offsets = [12, 0], sizes = [78, 4], strides = [1, 1]} : vector<100x4xbf16> to vector<78x4xbf16>
    %9 = vector.extract_strided_slice %2 {offsets = [20, 0], sizes = [78, 4], strides = [1, 1]} : vector<100x4xbf16> to vector<78x4xbf16>
    %10 = vector.extract_strided_slice %2 {offsets = [21, 0], sizes = [78, 4], strides = [1, 1]} : vector<100x4xbf16> to vector<78x4xbf16>
    %11 = vector.extract_strided_slice %2 {offsets = [22, 0], sizes = [78, 4], strides = [1, 1]} : vector<100x4xbf16> to vector<78x4xbf16>
    %12 = tpu.concatenate %3, %4, %5, %6, %7, %8, %9, %10, %11 in 1 : vector<78x4xbf16>, vector<78x4xbf16>, vector<78x4xbf16>, vector<78x4xbf16>, vector<78x4xbf16>, vector<78x4xbf16>, vector<78x4xbf16>, vector<78x4xbf16>, vector<78x4xbf16> -> vector<78x36xbf16>
    %c0_2 = arith.constant 0 : index
    %c0_3 = arith.constant 0 : index
    %c0_4 = arith.constant 0 : index
    %13 = vector.load %arg4[%c0_2, %c0_3, %c0_4] : memref<3x36x128xbf16, #tpu.memory_space<vmem>>, vector<1x36x128xbf16>
    %14 = vector.shape_cast %13 : vector<1x36x128xbf16> to vector<36x128xbf16>
    %cst_5 = arith.constant dense<0.000000e+00> : vector<78x128xf32>
    %15 = tpu.matmul %12, %14, %cst_5 {dimension_numbers = #tpu.dot_dimension_numbers<[1], [0], [0], [1], [0, 0, 1, 1], [], []>} : vector<78x36xbf16>, vector<36x128xbf16>, vector<78x128xf32> -> vector<78x128xf32>
    %16 = arith.addf %0, %15 : vector<78x128xf32>
    %c0_6 = arith.constant 0 : index
    %c0_7 = arith.constant 0 : index
    %c0_8 = arith.constant 0 : index
    %17 = vector.load %arg2[%c0_6, %c0_7, %c0_8] : memref<1x100x4xbf16, #tpu.memory_space<vmem>>, vector<1x100x4xbf16>
    %18 = vector.shape_cast %17 : vector<1x100x4xbf16> to vector<100x4xbf16>
    %19 = vector.extract_strided_slice %18 {offsets = [0, 0], sizes = [78, 4], strides = [1, 1]} : vector<100x4xbf16> to vector<78x4xbf16>
    %20 = vector.extract_strided_slice %18 {offsets = [1, 0], sizes = [78, 4], strides = [1, 1]} : vector<100x4xbf16> to vector<78x4xbf16>
    %21 = vector.extract_strided_slice %18 {offsets = [2, 0], sizes = [78, 4], strides = [1, 1]} : vector<100x4xbf16> to vector<78x4xbf16>
    %22 = vector.extract_strided_slice %18 {offsets = [10, 0], sizes = [78, 4], strides = [1, 1]} : vector<100x4xbf16> to vector<78x4xbf16>
    %23 = vector.extract_strided_slice %18 {offsets = [11, 0], sizes = [78, 4], strides = [1, 1]} : vector<100x4xbf16> to vector<78x4xbf16>
    %24 = vector.extract_strided_slice %18 {offsets = [12, 0], sizes = [78, 4], strides = [1, 1]} : vector<100x4xbf16> to vector<78x4xbf16>
    %25 = vector.extract_strided_slice %18 {offsets = [20, 0], sizes = [78, 4], strides = [1, 1]} : vector<100x4xbf16> to vector<78x4xbf16>
    %26 = vector.extract_strided_slice %18 {offsets = [21, 0], sizes = [78, 4], strides = [1, 1]} : vector<100x4xbf16> to vector<78x4xbf16>
    %27 = vector.extract_strided_slice %18 {offsets = [22, 0], sizes = [78, 4], strides = [1, 1]} : vector<100x4xbf16> to vector<78x4xbf16>
    %28 = tpu.concatenate %19, %20, %21, %22, %23, %24, %25, %26, %27 in 1 : vector<78x4xbf16>, vector<78x4xbf16>, vector<78x4xbf16>, vector<78x4xbf16>, vector<78x4xbf16>, vector<78x4xbf16>, vector<78x4xbf16>, vector<78x4xbf16>, vector<78x4xbf16> -> vector<78x36xbf16>
    %c1 = arith.constant 1 : index
    %c0_9 = arith.constant 0 : index
    %c0_10 = arith.constant 0 : index
    %29 = vector.load %arg4[%c1, %c0_9, %c0_10] : memref<3x36x128xbf16, #tpu.memory_space<vmem>>, vector<1x36x128xbf16>
    %30 = vector.shape_cast %29 : vector<1x36x128xbf16> to vector<36x128xbf16>
    %cst_11 = arith.constant dense<0.000000e+00> : vector<78x128xf32>
    %31 = tpu.matmul %28, %30, %cst_11 {dimension_numbers = #tpu.dot_dimension_numbers<[1], [0], [0], [1], [0, 0, 1, 1], [], []>} : vector<78x36xbf16>, vector<36x128xbf16>, vector<78x128xf32> -> vector<78x128xf32>
    %32 = arith.addf %16, %31 : vector<78x128xf32>
    %c0_12 = arith.constant 0 : index
    %c0_13 = arith.constant 0 : index
    %c0_14 = arith.constant 0 : index
    %33 = vector.load %arg3[%c0_12, %c0_13, %c0_14] : memref<1x100x4xbf16, #tpu.memory_space<vmem>>, vector<1x100x4xbf16>
    %34 = vector.shape_cast %33 : vector<1x100x4xbf16> to vector<100x4xbf16>
    %35 = vector.extract_strided_slice %34 {offsets = [0, 0], sizes = [78, 4], strides = [1, 1]} : vector<100x4xbf16> to vector<78x4xbf16>
    %36 = vector.extract_strided_slice %34 {offsets = [1, 0], sizes = [78, 4], strides = [1, 1]} : vector<100x4xbf16> to vector<78x4xbf16>
    %37 = vector.extract_strided_slice %34 {offsets = [2, 0], sizes = [78, 4], strides = [1, 1]} : vector<100x4xbf16> to vector<78x4xbf16>
    %38 = vector.extract_strided_slice %34 {offsets = [10, 0], sizes = [78, 4], strides = [1, 1]} : vector<100x4xbf16> to vector<78x4xbf16>
    %39 = vector.extract_strided_slice %34 {offsets = [11, 0], sizes = [78, 4], strides = [1, 1]} : vector<100x4xbf16> to vector<78x4xbf16>
    %40 = vector.extract_strided_slice %34 {offsets = [12, 0], sizes = [78, 4], strides = [1, 1]} : vector<100x4xbf16> to vector<78x4xbf16>
    %41 = vector.extract_strided_slice %34 {offsets = [20, 0], sizes = [78, 4], strides = [1, 1]} : vector<100x4xbf16> to vector<78x4xbf16>
    %42 = vector.extract_strided_slice %34 {offsets = [21, 0], sizes = [78, 4], strides = [1, 1]} : vector<100x4xbf16> to vector<78x4xbf16>
    %43 = vector.extract_strided_slice %34 {offsets = [22, 0], sizes = [78, 4], strides = [1, 1]} : vector<100x4xbf16> to vector<78x4xbf16>
    %44 = tpu.concatenate %35, %36, %37, %38, %39, %40, %41, %42, %43 in 1 : vector<78x4xbf16>, vector<78x4xbf16>, vector<78x4xbf16>, vector<78x4xbf16>, vector<78x4xbf16>, vector<78x4xbf16>, vector<78x4xbf16>, vector<78x4xbf16>, vector<78x4xbf16> -> vector<78x36xbf16>
    %c2 = arith.constant 2 : index
    %c0_15 = arith.constant 0 : index
    %c0_16 = arith.constant 0 : index
    %45 = vector.load %arg4[%c2, %c0_15, %c0_16] : memref<3x36x128xbf16, #tpu.memory_space<vmem>>, vector<1x36x128xbf16>
    %46 = vector.shape_cast %45 : vector<1x36x128xbf16> to vector<36x128xbf16>
    %cst_17 = arith.constant dense<0.000000e+00> : vector<78x128xf32>
    %47 = tpu.matmul %44, %46, %cst_17 {dimension_numbers = #tpu.dot_dimension_numbers<[1], [0], [0], [1], [0, 0, 1, 1], [], []>} : vector<78x36xbf16>, vector<36x128xbf16>, vector<78x128xf32> -> vector<78x128xf32>
    %48 = arith.addf %32, %47 : vector<78x128xf32>
    %49 = arith.truncf %48 : vector<78x128xf32> to vector<78x128xbf16>
    %c0_18 = arith.constant 0 : index
    %c0_19 = arith.constant 0 : index
    %c0_20 = arith.constant 0 : index
    %50 = vector.load %arg5[%c0_18, %c0_19, %c0_20] : memref<1x100x128xbf16, #tpu.memory_space<vmem>>, vector<1x78x128xbf16>
    %51 = vector.shape_cast %50 : vector<1x78x128xbf16> to vector<78x128xbf16>
    %52 = vector.shape_cast %49 : vector<78x128xbf16> to vector<1x78x128xbf16>
    tpu.vector_store %arg5[%c0_18, %c0_19, %c0_20], %52 {strides = array<i32>} : memref<1x100x128xbf16, #tpu.memory_space<vmem>>, vector<1x78x128xbf16>,
    %cst_21 = arith.constant 0.000000e+00 : bf16
    %53 = vector.broadcast %cst_21 : bf16 to vector<2x128xbf16>
    %c0_22 = arith.constant 0 : index
    %c78 = arith.constant 78 : index
    %c0_23 = arith.constant 0 : index
    %54 = vector.load %arg5[%c0_22, %c78, %c0_23] : memref<1x100x128xbf16, #tpu.memory_space<vmem>>, vector<1x2x128xbf16>
    %55 = vector.shape_cast %54 : vector<1x2x128xbf16> to vector<2x128xbf16>
    %56 = vector.shape_cast %53 : vector<2x128xbf16> to vector<1x2x128xbf16>
    tpu.vector_store %arg5[%c0_22, %c78, %c0_23], %56 {strides = array<i32>} : memref<1x100x128xbf16, #tpu.memory_space<vmem>>, vector<1x2x128xbf16>,
    %57 = tpu.iota {dimensions = array<i32: 0>} : vector<78x1xi32>
    %c10_i32 = arith.constant 10 : i32
    %c0_i32 = arith.constant 0 : i32
    %58 = arith.cmpi eq, %c10_i32, %c0_i32 : i32
    %c1_i32 = arith.constant 1 : i32
    %59 = arith.select %58, %c1_i32, %c10_i32 : i32
    %60 = vector.broadcast %59 : i32 to vector<78x1xi32>
    %61 = arith.remsi %57, %60 : vector<78x1xi32>
    %c0_i32_24 = arith.constant 0 : i32
    %62 = vector.broadcast %c0_i32_24 : i32 to vector<78x1xi32>
    %63 = arith.cmpi ne, %61, %62 : vector<78x1xi32>
    %c0_i32_25 = arith.constant 0 : i32
    %64 = vector.broadcast %c0_i32_25 : i32 to vector<78x1xi32>
    %65 = arith.cmpi slt, %61, %64 : vector<78x1xi32>
    %c0_i32_26 = arith.constant 0 : i32
    %66 = arith.cmpi slt, %59, %c0_i32_26 : i32
    %67 = vector.broadcast %66 : i1 to vector<78x1xi1>
    %68 = vector.broadcast %67 : vector<78x1xi1> to vector<78x1xi1>
    %69 = arith.xori %65, %68 : vector<78x1xi1>
    %70 = arith.andi %69, %63 : vector<78x1xi1>
    %71 = vector.broadcast %59 : i32 to vector<78x1xi32>
    %72 = arith.addi %61, %71 : vector<78x1xi32>
    %73 = arith.select %70, %72, %61 : vector<78x1xi1>, vector<78x1xi32>
    %c10_i32_27 = arith.constant 10 : i32
    %c0_i32_28 = arith.constant 0 : i32
    %74 = arith.cmpi eq, %c10_i32_27, %c0_i32_28 : i32
    %c1_i32_29 = arith.constant 1 : i32
    %75 = arith.select %74, %c1_i32_29, %c10_i32_27 : i32
    %76 = arith.remsi %arg0, %75 : i32
    %c0_i32_30 = arith.constant 0 : i32
    %77 = arith.cmpi ne, %76, %c0_i32_30 : i32
    %c0_i32_31 = arith.constant 0 : i32
    %78 = arith.cmpi slt, %76, %c0_i32_31 : i32
    %c0_i32_32 = arith.constant 0 : i32
    %79 = arith.cmpi slt, %75, %c0_i32_32 : i32
    %80 = arith.xori %78, %79 : i1
    %81 = arith.andi %80, %77 : i1
    %82 = arith.addi %76, %75 : i32
    %83 = arith.select %81, %82, %76 : i32
    %c8_i32 = arith.constant 8 : i32
    %84 = vector.broadcast %c8_i32 : i32 to vector<78x1xi32>
    %85 = arith.cmpi slt, %73, %84 : vector<78x1xi32>
    %c1_i32_33 = arith.constant 1 : i32
    %86 = arith.cmpi sge, %83, %c1_i32_33 : i32
    %c8_i32_34 = arith.constant 8 : i32
    %87 = arith.cmpi sle, %83, %c8_i32_34 : i32
    %88 = arith.andi %86, %87 : i1
    %89 = vector.broadcast %88 : i1 to vector<78x1xi1>
    %90 = arith.andi %85, %89 : vector<78x1xi1>
    %91 = arith.extui %90 : vector<78x1xi1> to vector<78x1xi32>
    %92 = arith.sitofp %91 : vector<78x1xi32> to vector<78x1xf32>
    %93 = vector.broadcast %92 : vector<78x1xf32> to vector<78x128xf32>
    %94 = arith.mulf %48, %93 : vector<78x128xf32>
    %cst_35 = arith.constant dense<0.000000e+00> : vector<128xf32>
    %95 = vector.multi_reduction <add>, %94, %cst_35 [0] : vector<78x128xf32> to vector<128xf32>
    %96 = vector.shape_cast %95 : vector<128xf32> to vector<1x128xf32>
    %c0_36 = arith.constant 0 : index
    %c0_37 = arith.constant 0 : index
    %c0_38 = arith.constant 0 : index
    %97 = vector.load %arg6[%c0_36, %c0_37, %c0_38] : memref<1x1x128xf32, #tpu.memory_space<vmem>>, vector<1x1x128xf32>
    %98 = vector.shape_cast %97 : vector<1x1x128xf32> to vector<1x128xf32>
    %99 = vector.shape_cast %96 : vector<1x128xf32> to vector<1x1x128xf32>
    tpu.vector_store %arg6[%c0_36, %c0_37, %c0_38], %99 {strides = array<i32>} : memref<1x1x128xf32, #tpu.memory_space<vmem>>, vector<1x1x128xf32>,
    %100 = arith.mulf %94, %48 : vector<78x128xf32>
    %cst_39 = arith.constant dense<0.000000e+00> : vector<128xf32>
    %101 = vector.multi_reduction <add>, %100, %cst_39 [0] : vector<78x128xf32> to vector<128xf32>
    %102 = vector.shape_cast %101 : vector<128xf32> to vector<1x128xf32>
    %c0_40 = arith.constant 0 : index
    %c0_41 = arith.constant 0 : index
    %c0_42 = arith.constant 0 : index
    %103 = vector.load %arg7[%c0_40, %c0_41, %c0_42] : memref<1x1x128xf32, #tpu.memory_space<vmem>>, vector<1x1x128xf32>
    %104 = vector.shape_cast %103 : vector<1x1x128xf32> to vector<1x128xf32>
    %105 = vector.shape_cast %102 : vector<1x128xf32> to vector<1x1x128xf32>
    tpu.vector_store %arg7[%c0_40, %c0_41, %c0_42], %105 {strides = array<i32>} : memref<1x1x128xf32, #tpu.memory_space<vmem>>, vector<1x1x128xf32>,
    return
  }
  func.func @transform_0(%arg0: i32) -> (i32, i32, i32) {
    %c0_i32 = arith.constant 0 : i32
    %c0_i32_0 = arith.constant 0 : i32
    %c0_i32_1 = arith.constant 0 : i32
    return %arg0, %c0_i32, %c0_i32_0 : i32, i32, i32
  }
  func.func @transform_1(%arg0: i32) -> (i32, i32, i32) {
    %c1_i32 = arith.constant 1 : i32
    %0 = arith.addi %arg0, %c1_i32 : i32
    %c0_i32 = arith.constant 0 : i32
    %c0_i32_0 = arith.constant 0 : i32
    %c0_i32_1 = arith.constant 0 : i32
    return %0, %c0_i32, %c0_i32_0 : i32, i32, i32
  }
  func.func @transform_2(%arg0: i32) -> (i32, i32, i32) {
    %c2_i32 = arith.constant 2 : i32
    %0 = arith.addi %arg0, %c2_i32 : i32
    %c0_i32 = arith.constant 0 : i32
    %c0_i32_0 = arith.constant 0 : i32
    %c0_i32_1 = arith.constant 0 : i32
    return %0, %c0_i32, %c0_i32_0 : i32, i32, i32
  }
  func.func @transform_3(%arg0: i32) -> (i32, i32, i32) {
    %c0_i32 = arith.constant 0 : i32
    %c0_i32_0 = arith.constant 0 : i32
    %c0_i32_1 = arith.constant 0 : i32
    %c0_i32_2 = arith.constant 0 : i32
    return %c0_i32, %c0_i32_0, %c0_i32_1 : i32, i32, i32
  }
  func.func @transform_4(%arg0: i32) -> (i32, i32, i32) {
    %c0_i32 = arith.constant 0 : i32
    %c0_i32_0 = arith.constant 0 : i32
    %c0_i32_1 = arith.constant 0 : i32
    return %arg0, %c0_i32, %c0_i32_0 : i32, i32, i32
  }
  func.func @transform_5(%arg0: i32) -> (i32, i32, i32) {
    %c0_i32 = arith.constant 0 : i32
    %c0_i32_0 = arith.constant 0 : i32
    %c0_i32_1 = arith.constant 0 : i32
    return %arg0, %c0_i32, %c0_i32_0 : i32, i32, i32
  }
  func.func @transform_6(%arg0: i32) -> (i32, i32, i32) {
    %c0_i32 = arith.constant 0 : i32
    %c0_i32_0 = arith.constant 0 : i32
    %c0_i32_1 = arith.constant 0 : i32
    return %arg0, %c0_i32, %c0_i32_0 : i32, i32, i32
  }
}

module attributes {stable_mosaic.version = 11 : i64} {
  func.func @bn_relu_kernel(%arg0: i32, %arg1: i32, %arg2: memref<1x8x10x128xbf16, #tpu.memory_space<vmem>>, %arg3: memref<1x1x128xf32, #tpu.memory_space<vmem>>, %arg4: memref<1x1x128xf32, #tpu.memory_space<vmem>>, %arg5: memref<1x1x8x8x8xf32, #tpu.memory_space<vmem>>) attributes {dimension_semantics = [#tpu.dimension_semantics<parallel>, #tpu.dimension_semantics<parallel>], iteration_bounds = array<i64: 2, 8>, scalar_prefetch = 0 : i64, scratch_operands = 0 : i64, tpu.core_type = #tpu.core_type<tc>, window_params = [{transform_indices = @transform_0, window_bounds = array<i64: 1, 8, 10, 128>}, {pipeline_mode = #tpu.pipeline_mode<synchronous>, transform_indices = @transform_1, window_bounds = array<i64: 1, 1, 128>}, {pipeline_mode = #tpu.pipeline_mode<synchronous>, transform_indices = @transform_2, window_bounds = array<i64: 1, 1, 128>}, {transform_indices = @transform_3, window_bounds = array<i64: 1, 1, 8, 8, 8>}]} {
    %c0 = arith.constant 0 : index
    %c0_0 = arith.constant 0 : index
    %c0_1 = arith.constant 0 : index
    %c0_2 = arith.constant 0 : index
    %0 = vector.load %arg2[%c0, %c0_0, %c0_1, %c0_2] : memref<1x8x10x128xbf16, #tpu.memory_space<vmem>>, vector<1x8x10x128xbf16>
    %1 = vector.shape_cast %0 : vector<1x8x10x128xbf16> to vector<8x10x128xbf16>
    %2 = arith.extf %1 : vector<8x10x128xbf16> to vector<8x10x128xf32>
    %c0_3 = arith.constant 0 : index
    %c0_4 = arith.constant 0 : index
    %c0_5 = arith.constant 0 : index
    %3 = vector.load %arg3[%c0_3, %c0_4, %c0_5] : memref<1x1x128xf32, #tpu.memory_space<vmem>>, vector<1x1x128xf32>
    %4 = vector.broadcast %3 : vector<1x1x128xf32> to vector<8x10x128xf32>
    %5 = arith.mulf %2, %4 : vector<8x10x128xf32>
    %c0_6 = arith.constant 0 : index
    %c0_7 = arith.constant 0 : index
    %c0_8 = arith.constant 0 : index
    %6 = vector.load %arg4[%c0_6, %c0_7, %c0_8] : memref<1x1x128xf32, #tpu.memory_space<vmem>>, vector<1x1x128xf32>
    %7 = vector.broadcast %6 : vector<1x1x128xf32> to vector<8x10x128xf32>
    %8 = arith.addf %5, %7 : vector<8x10x128xf32>
    %cst = arith.constant 0.000000e+00 : f32
    %9 = vector.broadcast %cst : f32 to vector<8x10x128xf32>
    %10 = arith.maximumf %8, %9 : vector<8x10x128xf32>
    %11 = vector.extract_strided_slice %10 {offsets = [0, 0, 0], sizes = [8, 8, 8], strides = [1, 1, 1]} : vector<8x10x128xf32> to vector<8x8x8xf32>
    %c0_9 = arith.constant 0 : index
    %c0_10 = arith.constant 0 : index
    %c0_11 = arith.constant 0 : index
    %c0_12 = arith.constant 0 : index
    %c0_13 = arith.constant 0 : index
    %12 = vector.load %arg5[%c0_9, %c0_10, %c0_11, %c0_12, %c0_13] : memref<1x1x8x8x8xf32, #tpu.memory_space<vmem>>, vector<1x1x8x8x8xf32>
    %13 = vector.shape_cast %12 : vector<1x1x8x8x8xf32> to vector<8x8x8xf32>
    %14 = vector.shape_cast %11 : vector<8x8x8xf32> to vector<1x1x8x8x8xf32>
    tpu.vector_store %arg5[%c0_9, %c0_10, %c0_11, %c0_12, %c0_13], %14 {strides = array<i32>} : memref<1x1x8x8x8xf32, #tpu.memory_space<vmem>>, vector<1x1x8x8x8xf32>,
    return
  }
  func.func @transform_0(%arg0: i32, %arg1: i32) -> (i32, i32, i32, i32) {
    %c10_i32 = arith.constant 10 : i32
    %0 = arith.muli %arg0, %c10_i32 : i32
    %c1_i32 = arith.constant 1 : i32
    %1 = arith.addi %0, %c1_i32 : i32
    %2 = arith.addi %1, %arg1 : i32
    %c0_i32 = arith.constant 0 : i32
    %c0_i32_0 = arith.constant 0 : i32
    %c0_i32_1 = arith.constant 0 : i32
    %c0_i32_2 = arith.constant 0 : i32
    return %2, %c0_i32, %c0_i32_0, %c0_i32_1 : i32, i32, i32, i32
  }
  func.func @transform_1(%arg0: i32, %arg1: i32) -> (i32, i32, i32) {
    %c0_i32 = arith.constant 0 : i32
    %c0_i32_0 = arith.constant 0 : i32
    %c0_i32_1 = arith.constant 0 : i32
    %c0_i32_2 = arith.constant 0 : i32
    return %c0_i32, %c0_i32_0, %c0_i32_1 : i32, i32, i32
  }
  func.func @transform_2(%arg0: i32, %arg1: i32) -> (i32, i32, i32) {
    %c0_i32 = arith.constant 0 : i32
    %c0_i32_0 = arith.constant 0 : i32
    %c0_i32_1 = arith.constant 0 : i32
    %c0_i32_2 = arith.constant 0 : i32
    return %c0_i32, %c0_i32_0, %c0_i32_1 : i32, i32, i32
  }
  func.func @transform_3(%arg0: i32, %arg1: i32) -> (i32, i32, i32, i32, i32) {
    %c0_i32 = arith.constant 0 : i32
    %c0_i32_0 = arith.constant 0 : i32
    %c0_i32_1 = arith.constant 0 : i32
    %c0_i32_2 = arith.constant 0 : i32
    return %arg0, %arg1, %c0_i32, %c0_i32_0, %c0_i32_1 : i32, i32, i32, i32, i32
  }
}

</mosaic_0001>

<bundles_post_ra>
// kernel: basic_convolution_block.3
= control target key start
LH: loop header
LB: loop body
LE: loop exit
PB: predicated region body
PF: predicated region fallthrough
CT: control target
= control target key end

     0   :  { %s477_s12 = smov 0   ;;  %s479_s13 = smov 0   ;;  %s545_s0 = inlined_call_operand.vmem [shape: bf16[20,10,10,128], index: 0, kind: input, shape index: {}]   ;;  %s546_s1 = inlined_call_operand.vmem [shape: f32[1,1,128], index: 1, kind: input, shape index: {}]   ;;  %s547_s2 = inlined_call_operand.vmem [shape: f32[1,1,128], index: 2, kind: input, shape index: {}]   ;;  %s548_s3 = inlined_call_operand.vmem [shape: f32[2,8,8,8,8], index: 3, kind: output, shape index: {}]  }
   0x1   :  { %s481_s14 = smov 0   ;;  %s483_s15 = smov 0  }
   0x2   :  { %s485_s16 = smov 0  }
   0x3 LB: > { %s22_s17 = sadd.s32 1, %s447_s14  ;;  %s25_s18 = sadd.s32 1, %s451_s15  ;;  %s455_s16 = sphi %s485_s16, %s13_s16   ;;  %s451_s15 = sphi %s483_s15, %s552_s15   ;;  %s447_s14 = sphi %s481_s14, %s551_s14   ;;  %s443_s13 = sphi %s479_s13, %s550_s13   ;;  %s439_s12 = sphi %s477_s12, %s549_s12  }
   0x4   : > { %p23_p0 = scmp.ge.s32.totalorder %s22_s17, 8  ;;  %p367_p1 = scmp.ge.s32.totalorder %s455_s16, 1 }
   0x5   : > { %p163_p2 = scmp.lt.s32.totalorder %s455_s16, 17 }
   0x6   : > { %s554_s17 = smov (%p23_p0, %s22_s17), 0  ;;  %s556_s18 = smov (!%p23_p0, %s25_s18), %s451_s15 }
   0x7   : > { %p164_p3 = pnand %p367_p1, %p163_p2  ;;  %p27_p4 = scmp.ge.s32.totalorder %s556_s18, 2 }
   0x8   : > { %s194_s19 = smul.u32 (!%p164_p3), 10, %s443_s13  ;;  %p205_p5 = scmp.lt.s32.totalorder (!%p164_p3), %s443_s13, 1 }
   0x9   : > { %s558_s18 = smov (%p27_p4, %s556_s18), 0  ;;  %167 = sbr.rel (%p164_p3) target bundleno = 31 (0x1f), region = 32 }
   0xa   : > { %s195_s20 = sadd.s32 (!%p164_p3), 1, %s194_s19  ;;  %p207_p6 = scmp.lt.s32.totalorder (!%p164_p3), %s439_s12, 7 }
   0xb   : > { %s196_s21 = sadd.s32 (!%p164_p3), %s439_s12, %s195_s20 }
   0xc   : > { %p197_p7 = scmp.lt.s32.totalorder (!%p164_p3), %s196_s21, 19 }
   0xe   : > { %s560_s13 = smov (!%p205_p5, %s443_s13), 1  ;;  %s562_s21 = smov (!%p197_p7, %s196_s21), 19  ;;  %v372_v0 = vld [vmem:[%s546_s1] ss:$0 sm:$0xff]  ;;  %vm268_vm0 = vcmask 64512  }
   0xf   : > { %s564_s12 = smov (!%p207_p6, %s439_s12), 7  ;;  %s376_s22 = smul.u32 80, %s562_s21  ;;  %v373_v9 = vld [vmem:[%s547_s2] ss:$0 sm:$0xff] }
  0x10   : > { %s370_s23 = sshll.u32 %s560_s13, 6  ;;  %s369_s24 = sshll.u32 %s564_s12, 3 }
  0x11   : > { %s201_s27 = scalar_lea.vmem %s545_s0, %s376_s22  ;;  %s513_s30 = sadd.s32 %s370_s23, %s369_s24 }
  0x12   : > { %v214_v1 = vld [vmem:[%s201_s27] ss:$8 sps:$4 sm:$0xff]   ;;  %v216_v2 = vld [vmem:[%s201_s27 + $0x10] ss:$8 sps:$4 sm:$0xff]   ;;  %s371_s6 = sshll.u32 %s513_s30, 3 }
  0x13   : > { %v222_v3 = vunpack.c.l.bf16 %v214_v1  ;;  %v223_v4 = vunpack.c.h.bf16 %v214_v1  ;;  %v224_v5 = vunpack.c.l.bf16 %v216_v2  ;;  %v225_v6 = vunpack.c.h.bf16 %v216_v2  ;;  %v218_v7 = vld [vmem:[%s201_s27 + $0x20] ss:$8 sps:$4 sm:$0xff]   ;;  %v220_v8 = vld [vmem:[%s201_s27 + $0x30] ss:$8 sps:$4 sm:$0xff]   ;;  %s213_s9 = scalar_lea.vmem %s548_s3, %s371_s6 }
  0x14   : > { %v226_v10 = vunpack.c.l.bf16 %v218_v7  ;;  %v227_v11 = vunpack.c.h.bf16 %v218_v7  ;;  %v228_v12 = vunpack.c.l.bf16 %v220_v8  ;;  %v229_v13 = vunpack.c.h.bf16 %v220_v8 }
  0x15   : > { %v237_v14 = vmul.f32 %v372_v0, %v222_v3  ;;  %v238_v15 = vmul.f32 %v372_v0, %v223_v4  ;;  %v239_v16 = vmul.f32 %v372_v0, %v224_v5  ;;  %v240_v17 = vmul.f32 %v372_v0, %v225_v6 }
  0x16   : > { %v241_v18 = vmul.f32 %v372_v0, %v226_v10  ;;  %v242_v19 = vmul.f32 %v372_v0, %v227_v11  ;;  %v243_v20 = vmul.f32 %v372_v0, %v228_v12  ;;  %v244_v21 = vmul.f32 %v372_v0, %v229_v13 }
  0x17   : > { %v252_v22 = vadd.f32 %v373_v9, %v237_v14  ;;  %v253_v23 = vadd.f32 %v373_v9, %v238_v15  ;;  %v254_v24 = vadd.f32 %v373_v9, %v239_v16  ;;  %v255_v25 = vadd.f32 %v373_v9, %v240_v17 }
  0x18   : > { %v256_v26 = vadd.f32 %v373_v9, %v241_v18  ;;  %v257_v27 = vadd.f32 %v373_v9, %v242_v19  ;;  %v258_v28 = vadd.f32 %v373_v9, %v243_v20  ;;  %v259_v29 = vadd.f32 %v373_v9, %v244_v21 }
  0x19   : > { %v260_v30 = vmax.f32 %v252_v22, 0.0  ;;  %v261_v31 = vmax.f32 %v253_v23, 0.0  ;;  %v262_v32 = vmax.f32 %v254_v24, 0.0  ;;  %v263_v33 = vmax.f32 %v255_v25, 0.0 }
  0x1a   : > { %v264_v34 = vmax.f32 %v256_v26, 0.0  ;;  %v265_v35 = vmax.f32 %v257_v27, 0.0  ;;  %v266_v36 = vmax.f32 %v258_v28, 0.0  ;;  %v267_v37 = vmax.f32 %v259_v29, 0.0 }
  0x1b   : > { %269 = vst.msk [vmem:[%s213_s9] sm:$0xff] %vm268_vm0, %v260_v30  ;;  %270 = vst.msk [vmem:[%s213_s9 + $0x8] sm:$0xff] %vm268_vm0, %v261_v31 }
  0x1c   : > { %271 = vst.msk [vmem:[%s213_s9 + $0x10] sm:$0xff] %vm268_vm0, %v262_v32  ;;  %272 = vst.msk [vmem:[%s213_s9 + $0x18] sm:$0xff] %vm268_vm0, %v263_v33 }
  0x1d   : > { %273 = vst.msk [vmem:[%s213_s9 + $0x20] sm:$0xff] %vm268_vm0, %v264_v34  ;;  %274 = vst.msk [vmem:[%s213_s9 + $0x28] sm:$0xff] %vm268_vm0, %v265_v35 }
  0x1e   : > { %275 = vst.msk [vmem:[%s213_s9 + $0x30] sm:$0xff] %vm268_vm0, %v266_v36  ;;  %276 = vst.msk [vmem:[%s213_s9 + $0x38] sm:$0xff] %vm268_vm0, %v267_v37 }
  0x1f PF: > { %s13_s16 = sadd.s32 1, %s455_s16   ;;  %s549_s12 = smov %s447_s14 }
  0x20   : > { %p10_p8 = scmp.ge.s32.totalorder %s13_s16, 18   ;;  %s550_s13 = smov %s451_s15 }
  0x21   : > { %s551_s14 = smov %s554_s17  ;;  %s552_s15 = smov %s558_s18 }
  0x22   :  { %12 = sbr.rel (!%p10_p8) target bundleno = 3 (0x3), region = 62 }

// kernel: basic_convolution_block.2
= control target key start
LH: loop header
LB: loop body
LE: loop exit
PB: predicated region body
PF: predicated region fallthrough
CT: control target
= control target key end

     0   :  { %s2685_s21 = smov 0   ;;  %s4123_s0 = inlined_call_operand.vmem [shape: bf16[22,100,4], index: 0, kind: input, shape index: {}, may-alias: {0,1,2}]   ;;  %s4124_s1 = inlined_call_operand.vmem [shape: bf16[22,100,4], index: 1, kind: input, shape index: {}, may-alias: {0,1,2}]   ;;  %s4125_s2 = inlined_call_operand.vmem [shape: bf16[22,100,4], index: 2, kind: input, shape index: {}, may-alias: {0,1,2}]   ;;  %s4126_s3 = inlined_call_operand.vmem [shape: bf16[3,36,128], index: 3, kind: input, shape index: {}]   ;;  %s4127_s4 = inlined_call_operand.vmem [shape: bf16[20,100,128], index: 4, kind: output, shape index: {0}]   ;;  %s4128_s5 = inlined_call_operand.vmem [shape: f32[20,1,128], index: 5, kind: output, shape index: {1}]   ;;  %s4129_s6 = inlined_call_operand.vmem [shape: f32[20,1,128], index: 6, kind: output, shape index: {2}]  }
   0x1 LB: > { %s2691_s22 = sadd.s32 4294967295, %s2637_s21   ;;  %p2292_p0 = scmp.ge.s32.totalorder %s2637_s21, 1  ;;  %s2637_s21 = sphi %s2685_s21, %s17_s21  }
   0x2   : > { %p245_p1 = scmp.lt.s32.totalorder %s2637_s21, 21 }
   0x4   : > { %p246_p2 = pnand %p2292_p0, %p245_p1 }
   0x5   : > { %s298_s23 = sadd.s32 (!%p246_p2), 1, %s2691_s22  ;;  %s2639_s28 = smov (!%p246_p2), 12  }
   0x6   : > { %249 = sbr.rel (%p246_p2) target bundleno = 595 (0x253), region = 36  ;;  %p299_p3 = scmp.lt.s32.totalorder (!%p246_p2), %s298_s23, 21 }
   0x7   : > { %s2640_s29 = smov (!%p246_p2), 8   ;;  %p293_p4 = scmp.lt.s32.totalorder (!%p246_p2), %s2691_s22, 21 }
   0x8   : > { %s305_s30 = sadd.s32 (!%p246_p2), 2, %s2691_s22  ;;  %s2641_s7 = smov (!%p246_p2), 24  }
   0x9   : > { %s2642_s8 = smov (!%p246_p2), 20   ;;  %p2791_p5 = scmp.lt.s32.totalorder (!%p246_p2), %s305_s30, 21 }
   0xa   : > { %s2643_s11 = smov (!%p246_p2), 32   ;;  %s2644_s12 = smov (!%p246_p2), 4  }
   0xb   : > { %s4146_s23 = smov (!%p299_p3, %s298_s23), 21  ;;  %vm412_vm0 = vcmask 1046528   ;;  %vm521_vm1 = vcmask 1045504   ;;  %vm612_vm2 = vcmask 1044480   ;;  %vm4131_vm3 = vsmask.f32 7424 }
   0xc   : > { %s2538_s24 = smul.u32 52, %s4146_s23  ;;  %vm568_vm4 = vsmask.f32 5376  ;;  %s4148_s30 = smov (!%p2791_p5, %s305_s30), 21  ;;  %vm4130_vm5 = vsmask.f32 6400 }
   0xd   : > { %s2810_s10 = scalar_select %p293_p4, %s2691_s22, 21  ;;  %vm1143_vm6 = vcmask 1041408   ;;  %vm2648_vm7 = vmmov 0   ;;  %vm634_vm8 = vcmask 31744   ;;  %vm645_vm9 = vcmask 64512  }
   0xe   : > { %s2699_s27 = scalar_lea.vmem %s4124_s1, %s2538_s24  ;;  %s2645_s14 = smov 28   ;;  %vm656_vm10 = vcmask 97280   ;;  %vm667_vm11 = vcmask 130048   ;;  %vm678_vm12 = vcmask 162816   ;;  %vm689_vm13 = vcmask 195584  }
   0xf   : > { %v732_v0 = vld [vmem:[%s2699_s27 + $0x14] sm:$0xf]  ;;  %v733_v1 = vld [vmem:[%s2699_s27 + $0x18] sm:$0xf]  ;;  %v734_v2 = vld [vmem:[%s2699_s27 + $0x1c] sm:$0xf] }
  0x10   : > { %v735_v3 = vld [vmem:[%s2699_s27 + $0x20] sm:$0xf]  ;;  %v2706_v4 = vld [vmem:[%s2699_s27 + $0x24] sm:$0xf]  ;;  %v2708_v5 = vcombine.low %v733_v1, %v734_v2  ;;  %v2710_v6 = vcombine.low %v732_v0, %v733_v1  ;;  %v2713_v7 = vld [vmem:[%s2699_s27 + $0x10] sm:$0xf] }
  0x11   : > { %v2716_v8 = vcombine.low %v735_v3, %v2706_v4  ;;  %v2718_v9 = vcombine.low %v734_v2, %v735_v3  ;;  %v2721_v10 = vcombine.low %v2713_v7, %v732_v0  ;;  %v2768_v34 = vld [vmem:[%s2699_s27 + $0x28] sm:$0xf]  ;;  %v727_v38 = vld [vmem:[%s2699_s27] sm:$0xf]  ;;  %v728_v39 = vld [vmem:[%s2699_s27 + $0x4] sm:$0xf] }
  0x12   : > { %v843_v11 = vrot.slane %v2710_v6, 1  ;;  %v819_v12 = vrot.slane %v2708_v5, 1  ;;  %v949_v13 = vrot.slane %v2708_v5, 2  ;;  %v924_v14 = vrot.slane %v2710_v6, 2  ;;  %v729_v40 = vld [vmem:[%s2699_s27 + $0x8] sm:$0xf] }
  0x13   : > { %v845_v15 = vrot.slane %v2718_v9, 1  ;;  %v817_v16 = vrot.slane %v2721_v10, 1  ;;  %v951_v17 = vrot.slane %v2716_v8, 2  ;;  %v926_v18 = vrot.slane %v2718_v9, 2  ;;  %v730_v45 = vld [vmem:[%s2699_s27 + $0xc] sm:$0xf] }
  0x14   : > { %v1013_v19 = vrot.slane %v2708_v5, 3  ;;  %v781_v20 = vshll.u32 %v2721_v10, 16  ;;  %v785_v21 = vshrl.u32 %v2721_v10, 16  ;;  %v1015_v25 = vrot.slane %v2716_v8, 3  ;;  %s2537_s13 = smul.u32 52, %s2810_s10  ;;  %s2646_s19 = smov 16  }
  0x15   : > { %v846_v22 = vsel %vm412_vm0, %v843_v11, %v845_v15  ;;  %v820_v23 = vsel %vm412_vm0, %v817_v16, %v819_v12  ;;  %v952_v24 = vsel %vm521_vm1, %v949_v13, %v951_v17  ;;  %v927_v26 = vsel %vm521_vm1, %v924_v14, %v926_v18  ;;  %s2539_s15 = smul.u32 52, %s4148_s30  ;;  %p312_p6 = scmp.lt.s32.totalorder %s2691_s22, 19 }
  0x16   : > { %853 = vrot.lane.b32.xlu1 %v846_v22, %s2639_s28  ;;  %827 = vrot.lane.b32.xlu0 %v820_v23, %s2640_s29  ;;  %v2757_v27 = vrot.slane %v781_v20, 1  ;;  %v789_v28 = vshll.u32 %v2708_v5, 16  ;;  %v821_v29 = vrot.slane %v2716_v8, 1  ;;  %v793_v30 = vshrl.u32 %v2708_v5, 16  ;;  %s2858_s18 = scalar_lea.vmem %s4123_s0, %s2537_s13  ;;  %p2044_p7 = scmp.lt.s32.totalorder %s2691_s22, 0 }
  0x17   : > { %v797_v31 = vshll.u32 %v2716_v8, 16  ;;  %v801_v32 = vshrl.u32 %v2716_v8, 16  ;;  %v880_v33 = vshrl.u32 %v2710_v6, 16  ;;  %v1016_v41 = vsel %vm612_vm2, %v1013_v19, %v1015_v25  ;;  %s2874_s24 = scalar_lea.vmem %s4125_s2, %s2539_s15 }
  0x18   : > { %v787_v35 = vor.u32 %v785_v21, %v2757_v27  ;;  %v791_v36 = vrot.slane %v789_v28, 1  ;;  %v975_v37 = vrot.slane %v789_v28, 3  ;;  %v974_v42 = vrot.slane %v793_v30, 2 }
  0x19   : > { %v978_v43 = vrot.slane %v801_v32, 2  ;;  %v979_v44 = vrot.slane %v797_v31, 3  ;;  %v882_v46 = vrot.slane %v880_v33, 1  ;;  %v883_v47 = vshll.u32 %v2710_v6, 16  ;;  %v2610_v6 = vld [vmem:[%s4126_s3 + $0x14] sm:$0xff]  }
  0x1a   : > { %961 = vrot.lane.b32.xlu1 %v952_v24, %s2641_s7  ;;  %936 = vrot.lane.b32.xlu0 %v927_v26, %s2642_s8  ;;  %v889_v48 = vshrl.u32 %v2718_v9, 16  ;;  %v892_v49 = vshll.u32 %v2718_v9, 16  ;;  %v792_v50 = vsel %vm4131_vm3, %v787_v35, %v791_v36  ;;  %v822_v51 = vsel %vm412_vm0, %v819_v12, %v821_v29 }
  0x1b   : > { %v2799_v52 = vor.u32 %v975_v37, %v974_v42  ;;  %v2801_v53 = vor.u32 %v979_v44, %v978_v43  ;;  %v885_v54 = vrot.slane %v883_v47, 2  ;;  %v2805_v57 = vcombine.low %v2706_v4, %v2768_v34  ;;  %v2853_v37 = vld [vmem:[%s2699_s27 + $0x2c] sm:$0xf] }
  0x1c   : > { %v891_v55 = vrot.slane %v889_v48, 1  ;;  %v894_v56 = vrot.slane %v892_v49, 2  ;;  %v795_v58 = vor.u32 %v793_v30, %v791_v36  ;;  %v2812_v59 = vrot.slane %v797_v31, 1 }
  0x1d   : > { %v2814_v60 = vcombine.low %v727_v38, %v728_v39  ;;  %v2816_v61 = vcombine.low %v729_v40, %v730_v45  ;;  %v981_v62 = vsel %vm568_vm4, %v2799_v52, %v2801_v53  ;;  %v2823_v63 = vor.u32 %v885_v54, %v882_v46 }
  0x1e   : > { %1025 = vrot.lane.b32.xlu1 %v1016_v41, %s2643_s11  ;;  %808 = vrot.lane.b32.xlu0 %v792_v50, %s2644_s12  ;;  %v895_v0 = vor.u32 %v894_v56, %v891_v55  ;;  %v898_v1 = vshrl.u32 %v2805_v57, 16  ;;  %v901_v12 = vshll.u32 %v2805_v57, 16  ;;  %v800_v22 = vsel %vm4131_vm3, %v795_v58, %v2812_v59 }
  0x1f   : > { %v766_v2 = vshrl.u32 %v2814_v60, 16  ;;  %v768_v3 = vshll.u32 %v2814_v60, 16  ;;  %v773_v4 = vshll.u32 %v2816_v61, 16  ;;  %v847_v24 = vrot.slane %v2805_v57, 1 }
  0x20   : > { %v900_v26 = vrot.slane %v898_v1, 1  ;;  %v903_v28 = vrot.slane %v901_v12, 2  ;;  %v2315_v30 = vcombine.low %v728_v39, %v729_v40  ;;  %v896_v31 = vsel %vm4130_vm5, %v2823_v63, %v895_v0 }
  0x21   : > { %v770_v23 = vrot.slane %v768_v3, 1  ;;  %v2847_v35 = vrot.slane %v773_v4, 1  ;;  %v2850_v36 = vcombine.low %v730_v45, %v2713_v7  ;;  %v814_v38 = vrot.slane %v2814_v60, 1 }
  0x22   : > { %829 = vrot.lane.b32.xlu1 %v822_v51, %s2640_s29  ;;  %1004 = vrot.lane.b32.xlu0 %v981_v62, %s2645_s14  ;;  %v815_v39 = vrot.slane %v2816_v61, 1  ;;  %v848_v7 = vsel %vm412_vm0, %v845_v15, %v847_v24  ;;  %v2869_v40 = vor.u32 %v903_v28, %v900_v26  ;;  %v863_v41 = vshrl.u32 %v2315_v30, 16 }
  0x23   : > { %v771_v33 = vor.u32 %v770_v23, %v766_v2  ;;  %v866_v42 = vshll.u32 %v2315_v30, 16  ;;  %v2880_v44 = vcombine.low %v2768_v34, %v2853_v37  ;;  %v871_v45 = vshrl.u32 %v2850_v36, 16 }
  0x24   : > { %v874_v15 = vshll.u32 %v2850_v36, 16  ;;  %v816_v46 = vsel %vm412_vm0, %v814_v38, %v815_v39  ;;  %v928_v47 = vrot.slane %v2805_v57, 2  ;;  %v840_v48 = vrot.slane %v2315_v30, 1 }
  0x25   : > { %v776_v43 = vsel %vm4131_vm3, %v771_v33, %v2847_v35  ;;  %v905_v49 = vsel %vm4130_vm5, %v895_v0, %v2869_v40  ;;  %v841_v34 = vrot.slane %v2850_v36, 1  ;;  %v865_v50 = vrot.slane %v863_v41, 1 }
  0x26   : > { %915 = vrot.lane.b32.xlu1 %v896_v31, %s2646_s19  ;;  %810 = vrot.lane.b32.xlu0 %v800_v22, %s2644_s12  ;;  %v868_v51 = vrot.slane %v866_v42, 2  ;;  %v873_v54 = vrot.slane %v871_v45, 1  ;;  %v876_v55 = vrot.slane %v874_v15, 2  ;;  %v983_v56 = vshrl.u32 %v2880_v44, 16 }
  0x27   : > { %v986_v58 = vshll.u32 %v2880_v44, 16  ;;  %v929_v62 = vsel %vm521_vm1, %v926_v18, %v928_v47  ;;  %v842_v0 = vsel %vm412_vm0, %v840_v48, %v841_v34  ;;  %v953_v1 = vrot.slane %v2880_v44, 2 }
  0x28   : > { %v869_v2 = vor.u32 %v868_v51, %v865_v50  ;;  %v2906_v3 = vor.u32 %v876_v55, %v873_v54  ;;  %v985_v12 = vrot.slane %v983_v56, 2  ;;  %v921_v23 = vrot.slane %v2315_v30, 2  ;;  %v2974_v54 = vld [vmem:[%s2699_s27 + $0x30] ss:$0 sps:$4 sm:$0x33]  }
  0x29   : > { %v988_v22 = vrot.slane %v986_v58, 3  ;;  %v922_v9 = vrot.slane %v2850_v36, 2  ;;  %v954_v18 = vsel %vm521_vm1, %v951_v17, %v953_v1  ;;  %v777_v31 = vshrl.u32 %v2816_v61, 16  ;;  %v324_v58 = vld [vmem:[%s2858_s18] sm:$0xf] }
  0x2a   : > { %855 = vrot.lane.b32.xlu1 %v848_v7, %s2639_s28  ;;  %804 = vrot.lane.b32.xlu0 %v776_v43, %s2644_s12  ;;  %v878_v26 = vsel %vm4130_vm5, %v869_v2, %v2906_v3  ;;  %v946_v33 = vrot.slane %v2816_v61, 2  ;;  %v1017_v38 = vrot.slane %v2880_v44, 3  ;;  %v947_v17 = vrot.slane %v2721_v10, 2 }
  0x2b   : > { %v2918_v28 = vor.u32 %v988_v22, %v985_v12  ;;  %v923_v30 = vsel %vm521_vm1, %v921_v23, %v922_v9  ;;  %v968_v7 = vrot.slane %v773_v4, 3  ;;  %v967_v42 = vrot.slane %v777_v31, 2  ;;  %v2608_v12 = vld [vmem:[%s4126_s3 + $0x24] ss:$0 sps:$4 sm:$0x33]  }
  0x2c   : > { %v970_v43 = vrot.slane %v785_v21, 2  ;;  %v971_v45 = vrot.slane %v781_v20, 3  ;;  %v1018_v4 = vsel %vm612_vm2, %v1015_v25, %v1017_v38  ;;  %v803_v20 = vor.u32 %v801_v32, %v2812_v59  ;;  %v326_v22 = vld [vmem:[%s2858_s18 + $0x8] sm:$0xf]  ;;  %v327_v23 = vld [vmem:[%s2858_s18 + $0xc] sm:$0xf] }
  0x2d   : > { %v990_v41 = vsel %vm568_vm4, %v2801_v53, %v2918_v28  ;;  %v948_v53 = vsel %vm521_vm1, %v946_v33, %v947_v17  ;;  %v969_v15 = vor.u32 %v968_v7, %v967_v42  ;;  %v1010_v25 = vrot.slane %v2816_v61, 3  ;;  %v1324_v42 = vld [vmem:[%s2874_s24 + $0xc] sm:$0xf] }
  0x2e   : > { %917 = vrot.lane.b32.xlu1 %v905_v49, %s2646_s19  ;;  %823 = vrot.lane.b32.xlu0 %v816_v46, %s2640_s29  ;;  %v2948_v46 = vor.u32 %v971_v45, %v970_v43  ;;  %v1011_v48 = vrot.slane %v2721_v10, 3  ;;  %v2320_v49 = vcombine.low %v2853_v37, %v2853_v37  ;;  %v779_v32 = vor.u32 %v777_v31, %v2847_v35 }
  0x2f   : > { %v818_v35 = vsel %vm412_vm0, %v815_v39, %v817_v16  ;;  %v992_v55 = vshrl.u32 %v2974_v54, 16  ;;  %v995_v56 = vshll.u32 %v2974_v54, 16  ;;  %v844_v16 = vsel %vm412_vm0, %v841_v34, %v843_v11  ;;  %v3021_v34 = vld [vmem:[%s2874_s24 + $0x4] sm:$0xf] }
  0x30   : > { %v973_v21 = vsel %vm568_vm4, %v969_v15, %v2948_v46  ;;  %v1012_v50 = vsel %vm612_vm2, %v1010_v25, %v1011_v48  ;;  %v907_v59 = vshll.u32 %v2320_v49, 16  ;;  %v784_v37 = vsel %vm4131_vm3, %v779_v32, %v2757_v27  ;;  %v328_v15 = vld [vmem:[%s2858_s18 + $0x10] sm:$0xf] }
  0x31   : > { %v930_v27 = vrot.slane %v2320_v49, 2  ;;  %v955_v39 = vrot.slane %v2974_v54, 2  ;;  %v887_v57 = vsel %vm4130_vm5, %v2906_v3, %v2823_v63  ;;  %v3023_v31 = vcombine.low %v326_v22, %v327_v23 }
  0x32   : > { %938 = vrot.lane.b32.xlu1 %v929_v62, %s2642_s8  ;;  %849 = vrot.lane.b32.xlu0 %v842_v0, %s2639_s28  ;;  %v909_v51 = vrot.slane %v907_v59, 2  ;;  %v994_v62 = vrot.slane %v992_v55, 2  ;;  %v997_v0 = vrot.slane %v995_v56, 3  ;;  %v925_v3 = vsel %vm521_vm1, %v922_v9, %v924_v14  ;;  %v3113_v56 = vld [vmem:[%s2858_s18 + $0x14] sm:$0xf] }
  0x33   : > { %v956_v11 = vsel %vm521_vm1, %v953_v1, %v955_v39  ;;  %v2609_v1 = vld [vmem:[%s4126_s3 + $0x1c] sm:$0xff]   ;;  %v1019_v7 = vrot.slane %v2974_v54, 3  ;;  %v950_v9 = vsel %vm521_vm1, %v947_v17, %v949_v13  ;;  %v3075_v49 = vcombine.low %v327_v23, %v328_v15 }
  0x34   : > { %v414_v44 = vrot.slane %v3023_v31, 1  ;;  %v977_v32 = vsel %vm568_vm4, %v2948_v46, %v2799_v52  ;;  %vm700_vm14 = vcmask 228352   ;;  %vm711_vm15 = vcmask 261120  }
  0x35   : > { %v471_v54 = vshrl.u32 %v3075_v49, 16 }
  0x36   : > { %963 = vrot.lane.b32.xlu1 %v954_v18, %s2641_s7  ;;  %911 = vrot.lane.b32.xlu0 %v878_v26, %s2646_s19  ;;  %v2647_v18 = vmov 0.0   ;;  %v998_v26 = vor.u32 %v997_v0, %v994_v62 }
  0x37   : > { %2531 = vmatprep.subr.bf16.mxu1 %v2647_v18  ;;  %2453 = vmatprep.subr.bf16.mxu0 %v2647_v18 }
  0x38   : > { %v999_v43 = vsel %vm568_vm4, %v2918_v28, %v998_v26  ;;  %2467 = vmatprep.mubr.msk.bf16.mxu1 %vm2648_vm7, %v2647_v18  ;;  %2459 = vmatprep.mubr.msk.bf16.mxu0 %vm2648_vm7, %v2647_v18 }
  0x3a   : > { %1006 = vrot.lane.b32.xlu1 %v990_v41, %s2645_s14  ;;  %932 = vrot.lane.b32.xlu0 %v923_v30, %s2642_s8  ;;  %v1145_v30 = vsel %vm1143_vm6, %v2608_v12, 0  ;;  %v1323_v41 = vld [vmem:[%s2874_s24 + $0x8] sm:$0xf] }
  0x3b   : > { %2534 = vmatpush3.bf16.msra.mxu1 %v1145_v30  ;;  %2454 = vmatpush3.bf16.msra.mxu0 %v1145_v30  ;;  %v3053_v14 = vcombine.low %v1323_v41, %v1324_v42 }
  0x3c   : > { %2532 = vmatprep.subr.bf16.mxu1 %v2647_v18  ;;  %2455 = vmatprep.subr.bf16.mxu0 %v2647_v18 }
  0x3d   : > { %v1409_v12 = vrot.slane %v3053_v14, 1 }
  0x3e   : > { %1027 = vrot.lane.b32.xlu1 %v1018_v4, %s2643_s11  ;;  %957 = vrot.lane.b32.xlu0 %v948_v53, %s2641_s7  ;;  %v371_v53 = vshll.u32 %v3023_v31, 16 }
  0x3f   : > { %2535 = vmatpush3.bf16.msra.mxu1 %v2609_v1  ;;  %2456 = vmatpush3.bf16.msra.mxu0 %v2609_v1 }
  0x40   : > { %2533 = vmatprep.subr.bf16.mxu1 %v2647_v18  ;;  %v3073_v25 = vrot.slane %v371_v53, 1  ;;  %2457 = vmatprep.subr.bf16.mxu0 %v2647_v18 }
  0x42   : > { %1000 = vrot.lane.b32.xlu1 %v973_v21, %s2645_s14  ;;  %812 = vrot.lane.b32.xlu0 %v803_v20, %s2644_s12  ;;  %v1020_v20 = vsel %vm612_vm2, %v1017_v38, %v1019_v7 }
  0x43   : > { %2536 = vmatpush3.bf16.msra.mxu1 %v2610_v6  ;;  %2458 = vmatpush3.bf16.msra.mxu0 %v2610_v6 }
  0x44   : > { %2479 = vmatprep.subr.bf16.mxu1 %v2647_v18  ;;  %2505 = vmatprep.subr.bf16.mxu0 %v2647_v18 }
  0x46   : > { %1021 = vrot.lane.b32.xlu1 %v1012_v50, %s2643_s11  ;;  %831 = vrot.lane.b32.xlu0 %v821_v29, %s2640_s29  ;;  %v910_v29 = vsel %vm4130_vm5, %v2869_v40, %v909_v51  ;;  %v931_v40 = vsel %vm521_vm1, %v928_v47, %v930_v27  ;;  %v1321_v47 = vld [vmem:[%s2874_s24] sm:$0xf]  ;;  %v1367_v50 = vshll.u32 %v3053_v14, 16  ;;  %v1014_v27 = vsel %vm612_vm2, %v1011_v48, %v1013_v19 }
  0x47   : > { %v3031_v63 = vcombine.low %v1321_v47, %v3021_v34  ;;  %v2349_v19 = vcombine.low %v3021_v34, %v1323_v41 }
  0x48   : > { %v3108_v55 = vrot.slane %v1367_v50, 1 }
  0x49   : > { %v1362_v36 = vshll.u32 %v3031_v63, 16  ;;  %v1360_v38 = vshrl.u32 %v3031_v63, 16  ;;  %v1408_v0 = vrot.slane %v3031_v63, 1  ;;  %v1457_v23 = vshrl.u32 %v2349_v19, 16 }
  0x4a   : > { %857 = vrot.lane.b32.xlu1 %v847_v24, %s2639_s28  ;;  %806 = vrot.lane.b32.xlu0 %v784_v37, %s2644_s12  ;;  %v325_v24 = vld [vmem:[%s2858_s18 + $0x4] sm:$0xf] }
  0x4b   : > { %v3002_v2 = vcombine.low %v324_v58, %v325_v24  ;;  %v3066_v28 = vcombine.low %v325_v24, %v326_v22  ;;  %v1364_v17 = vrot.slane %v1362_v36, 1  ;;  %v440_v24 = vrot.slane %v3075_v49, 1 }
  0x4c   : > { %v3123_v22 = vcombine.low %v328_v15, %v3113_v56  ;;  %v1410_v1 = vsel %vm412_vm0, %v1408_v0, %v1409_v12  ;;  %v1540_v0 = vrot.slane %v3053_v14, 2 }
  0x4d   : > { %v366_v33 = vshll.u32 %v3002_v2, 16  ;;  %v364_v45 = vshrl.u32 %v3002_v2, 16  ;;  %v413_v13 = vrot.slane %v3002_v2, 1  ;;  %v463_v59 = vshrl.u32 %v3066_v28, 16 }
  0x4e   : > { %919 = vrot.lane.b32.xlu1 %v910_v29, %s2646_s19  ;;  %825 = vrot.lane.b32.xlu0 %v818_v35, %s2640_s29  ;;  %v466_v51 = vshll.u32 %v3066_v28, 16  ;;  %v474_v35 = vshll.u32 %v3075_v49, 16  ;;  %v1325_v29 = vld [vmem:[%s2874_s24 + $0x10] sm:$0xf]  ;;  %v1365_v46 = vor.u32 %v1364_v17, %v1360_v38  ;;  %v439_v58 = vrot.slane %v3066_v28, 1 }
  0x4f   : > { %v368_v4 = vrot.slane %v366_v33, 1  ;;  %v415_v52 = vsel %vm412_vm0, %v413_v13, %v414_v44  ;;  %v3118_v48 = vcombine.low %v1324_v42, %v1325_v29  ;;  %v522_v41 = vrot.slane %v3066_v28, 2 }
  0x50   : > { %v468_v39 = vrot.slane %v466_v51, 2  ;;  %v476_v62 = vrot.slane %v474_v35, 2  ;;  %v1370_v34 = vsel %vm4131_vm3, %v1365_v46, %v3108_v55  ;;  %v441_v26 = vsel %vm412_vm0, %v439_v58, %v440_v24 }
  0x51   : > { %v369_v21 = vor.u32 %v368_v4, %v364_v45  ;;  %v1468_v47 = vshll.u32 %v3118_v48, 16  ;;  %v1435_v7 = vrot.slane %v3118_v48, 1  ;;  %v523_v42 = vrot.slane %v3075_v49, 2 }
  0x52   : > { %940 = vrot.lane.b32.xlu1 %v931_v40, %s2642_s8  ;;  %851 = vrot.lane.b32.xlu0 %v844_v16, %s2639_s28  ;;  %v465_v16 = vrot.slane %v463_v59, 1  ;;  %v473_v40 = vrot.slane %v471_v54, 1  ;;  %v1459_v45 = vrot.slane %v1457_v23, 1  ;;  %v383_v28 = vshrl.u32 %v3123_v22, 16 }
  0x53   : > { %v374_v37 = vsel %vm4131_vm3, %v369_v21, %v3073_v25  ;;  %v1470_v6 = vrot.slane %v1468_v47, 2  ;;  %v524_v13 = vsel %vm521_vm1, %v522_v41, %v523_v42  ;;  %v547_v38 = vrot.slane %v3023_v31, 2 }
  0x54   : > { %v469_v33 = vor.u32 %v468_v39, %v465_v16  ;;  %v3134_v30 = vor.u32 %v476_v62, %v473_v40  ;;  %v570_v54 = vrot.slane %v371_v53, 3  ;;  %v572_v35 = vrot.slane %v383_v28, 2 }
  0x55   : > { %v1371_v53 = vshrl.u32 %v3053_v14, 16 }
  0x56   : > { %965 = vrot.lane.b32.xlu1 %v956_v11, %s2641_s7  ;;  %913 = vrot.lane.b32.xlu0 %v887_v57, %s2646_s19  ;;  %v1460_v11 = vshll.u32 %v2349_v19, 16  ;;  %v1465_v57 = vshrl.u32 %v3118_v48, 16  ;;  %v478_v36 = vsel %vm4130_vm5, %v469_v33, %v3134_v30 }
  0x57   : > { %v1561_v47 = vrot.slane %v1371_v53, 2 }
  0x58   : > { %v1462_v4 = vrot.slane %v1460_v11, 2  ;;  %v1467_v15 = vrot.slane %v1465_v57, 1  ;;  %v613_v11 = vrot.slane %v3023_v31, 3  ;;  %v614_v57 = vrot.slane %v3123_v22, 3 }
  0x5a   : > { %1008 = vrot.lane.b32.xlu1 %v999_v43, %s2645_s14  ;;  %934 = vrot.lane.b32.xlu0 %v925_v3, %s2642_s8  ;;  %v1434_v3 = vrot.slane %v2349_v19, 1  ;;  %v3145_v43 = vld [vmem:[%s2874_s24 + $0x14] sm:$0xf]  ;;  %v3164_v59 = vor.u32 %v1470_v6, %v1467_v15 }
  0x5b   : > { %v3153_v21 = vcombine.low %v1325_v29, %v3145_v43 }
  0x5c   : > { %v1436_v17 = vsel %vm412_vm0, %v1434_v3, %v1435_v7  ;;  %v330_v3 = vld [vmem:[%s2858_s18 + $0x18] sm:$0xf] }
  0x5d   : > { %v1379_v40 = vshrl.u32 %v3153_v21, 16  ;;  %v1541_v23 = vrot.slane %v3153_v21, 2 }
  0x5e   : > { %1029 = vrot.lane.b32.xlu1 %v1020_v20, %s2643_s11  ;;  %959 = vrot.lane.b32.xlu0 %v950_v9, %s2641_s7  ;;  %v375_v9 = vshrl.u32 %v3023_v31, 16  ;;  %v379_v20 = vshll.u32 %v3123_v22, 16 }
  0x5f   : > { %v1564_v33 = vrot.slane %v1379_v40, 2  ;;  %v1542_v41 = vsel %vm521_vm1, %v1540_v0, %v1541_v23 }
  0x60   : > { %v569_v51 = vrot.slane %v375_v9, 2  ;;  %v573_v29 = vrot.slane %v379_v20, 3 }
  0x62   : > { %1002 = vrot.lane.b32.xlu1 %v977_v32, %s2645_s14  ;;  %402 = vrot.lane.b32.xlu0 %v374_v37, %s2644_s12  ;;  %v1463_v32 = vor.u32 %v1462_v4, %v1459_v45  ;;  %v548_v37 = vrot.slane %v3123_v22, 2  ;;  %v571_v16 = vor.u32 %v570_v54, %v569_v51  ;;  %v3180_v39 = vor.u32 %v573_v29, %v572_v35 }
  0x63   : > { %v377_v45 = vor.u32 %v375_v9, %v3073_v25  ;;  %v3206_v4 = vrot.slane %v379_v20, 1  ;;  %v1604_v9 = vrot.slane %v3053_v14, 3  ;;  %v1605_v20 = vrot.slane %v3153_v21, 3 }
  0x64   : > { %v1472_v46 = vsel %vm4130_vm5, %v1463_v32, %v3164_v59  ;;  %v549_v58 = vsel %vm521_vm1, %v547_v38, %v548_v37  ;;  %v416_v38 = vrot.slane %v3123_v22, 1  ;;  %v1327_v32 = vld [vmem:[%s2874_s24 + $0x18] sm:$0xf]  ;;  %v1373_v54 = vor.u32 %v1371_v53, %v3108_v55 }
  0x65   : > { %v382_v25 = vsel %vm4131_vm3, %v377_v45, %v3206_v4  ;;  %v1606_v51 = vsel %vm612_vm2, %v1604_v9, %v1605_v20  ;;  %v3237_v29 = vcombine.low %v3145_v43, %v1327_v32  ;;  %v1411_v43 = vrot.slane %v3153_v21, 1 }
  0x66   : > { %1023 = vrot.lane.b32.xlu1 %v1014_v27, %s2643_s11  ;;  %422 = vrot.lane.b32.xlu0 %v415_v52, %s2640_s29  ;;  %v1515_v27 = vrot.slane %v2349_v19, 2  ;;  %v1516_v52 = vrot.slane %v3118_v48, 2  ;;  %v1375_v19 = vshll.u32 %v3153_v21, 16 }
  0x67   : > { %v1474_v53 = vshrl.u32 %v3237_v29, 16 }
  0x68   : > { %v1517_v62 = vsel %vm521_vm1, %v1515_v27, %v1516_v52  ;;  %v3234_v35 = vrot.slane %v1375_v19, 1  ;;  %v417_v27 = vsel %vm412_vm0, %v414_v44, %v416_v38 }
  0x6a   : > { %1398 = vrot.lane.b32.xlu1 %v1370_v34, %s2644_s12  ;;  %448 = vrot.lane.b32.xlu0 %v441_v26, %s2639_s28  ;;  %v575_v34 = vsel %vm568_vm4, %v571_v16, %v3180_v39  ;;  %v1562_v26 = vrot.slane %v1367_v50, 3  ;;  %v615_v50 = vsel %vm612_vm2, %v613_v11, %v614_v57  ;;  %v1378_v44 = vsel %vm4131_vm3, %v1373_v54, %v3234_v35 }
  0x6b   : > { %v1477_v11 = vshll.u32 %v3237_v29, 16 }
  0x6c   : > { %v1563_v15 = vor.u32 %v1562_v26, %v1561_v47  ;;  %v1412_v26 = vsel %vm412_vm0, %v1409_v12, %v1411_v43 }
  0x6d   : > { %v1479_v45 = vrot.slane %v1477_v11, 2 }
  0x6e   : > { %1417 = vrot.lane.b32.xlu1 %v1410_v1, %s2640_s29  ;;  %511 = vrot.lane.b32.xlu0 %v478_v36, %s2646_s19  ;;  %v1565_v1 = vrot.slane %v1375_v19, 3  ;;  %v3214_v36 = vcombine.low %v3113_v56, %v330_v3 }
  0x70   : > { %v3211_v6 = vor.u32 %v1565_v1, %v1564_v33  ;;  %v480_v56 = vshrl.u32 %v3214_v36, 16  ;;  %v1437_v33 = vrot.slane %v3237_v29, 1  ;;  %v1476_v1 = vrot.slane %v1474_v53, 1 }
  0x72   : > { %1443 = vrot.lane.b32.xlu1 %v1436_v17, %s2639_s28  ;;  %533 = vrot.lane.b32.xlu0 %v524_v13, %s2642_s8  ;;  %v1567_v13 = vsel %vm568_vm4, %v1563_v15, %v3211_v6  ;;  %v483_v17 = vshll.u32 %v3214_v36, 16  ;;  %v482_v16 = vrot.slane %v480_v56, 1  ;;  %v1438_v56 = vsel %vm412_vm0, %v1435_v7, %v1437_v33 }
  0x76   : > { %1505 = vrot.lane.b32.xlu1 %v1472_v46, %s2646_s19  ;;  %558 = vrot.lane.b32.xlu0 %v549_v58, %s2641_s7  ;;  %v3245_v46 = vld [vmem:[%s2858_s18 + $0x1c] sm:$0xf]  ;;  %v442_v58 = vrot.slane %v3214_v36, 1 }
  0x77   : > { %v3251_v55 = vcombine.low %v330_v3, %v3245_v46 }
  0x78   : > { %v443_v19 = vsel %vm412_vm0, %v440_v24, %v442_v58  ;;  %v525_v24 = vrot.slane %v3214_v36, 2 }
  0x79   : > { %v391_v15 = vshrl.u32 %v3251_v55, 16 }
  0x7a   : > { %1526 = vrot.lane.b32.xlu1 %v1517_v62, %s2642_s8  ;;  %602 = vrot.lane.b32.xlu0 %v575_v34, %s2645_s14  ;;  %v485_v62 = vrot.slane %v483_v17, 2  ;;  %v3298_v17 = vor.u32 %v1479_v45, %v1476_v1 }
  0x7c   : > { %v3262_v0 = vor.u32 %v485_v62, %v482_v16  ;;  %v1481_v16 = vsel %vm4130_vm5, %v3164_v59, %v3298_v17 }
  0x7e   : > { %1551 = vrot.lane.b32.xlu1 %v1542_v41, %s2641_s7  ;;  %624 = vrot.lane.b32.xlu0 %v615_v50, %s2643_s11  ;;  %v487_v3 = vsel %vm4130_vm5, %v3134_v30, %v3262_v0  ;;  %v3278_v41 = vld [vmem:[%s2874_s24 + $0x1c] sm:$0xf]  ;;  %v387_v50 = vshll.u32 %v3251_v55, 16  ;;  %v526_v30 = vsel %vm521_vm1, %v523_v42, %v525_v24  ;;  %v1518_v42 = vrot.slane %v3237_v29, 2  ;;  %v334_v29 = vld [vmem:[%s2858_s18 + $0x28] sm:$0xf] }
  0x7f   : > { %v3285_v12 = vcombine.low %v1327_v32, %v3278_v41  ;;  %v576_v32 = vrot.slane %v391_v15, 2  ;;  %vm1132_vm5 = vcmask 293888  }
  0x80   : > { %v1519_v59 = vsel %vm521_vm1, %v1516_v52, %v1518_v42  ;;  %v332_v52 = vld [vmem:[%s2858_s18 + $0x20] sm:$0xf] }
  0x81   : > { %v1387_v53 = vshrl.u32 %v3285_v12, 16 }
  0x82   : > { %1594 = vrot.lane.b32.xlu1 %v1567_v13, %s2645_s14  ;;  %404 = vrot.lane.b32.xlu0 %v382_v25, %s2644_s12  ;;  %v550_v13 = vrot.slane %v3251_v55, 2 }
  0x84   : > { %v551_v7 = vsel %vm521_vm1, %v548_v37, %v550_v13 }
  0x86   : > { %1615 = vrot.lane.b32.xlu1 %v1606_v51, %s2643_s11  ;;  %424 = vrot.lane.b32.xlu0 %v417_v27, %s2640_s29  ;;  %v577_v51 = vrot.slane %v387_v50, 3 }
  0x88   : > { %v854_v47 = vpop.permute.xlu1 %853  ;;  %v828_v34 = vpop.permute.xlu0 %827  ;;  %v3315_v62 = vor.u32 %v577_v51, %v576_v32 }
  0x8a   : > { %1400 = vrot.lane.b32.xlu1 %v1378_v44, %s2644_s12  ;;  %450 = vrot.lane.b32.xlu0 %v443_v19, %s2639_s28  ;;  %v579_v37 = vsel %vm568_vm4, %v3180_v39, %v3315_v62  ;;  %v2619_v39 = vld [vmem:[%s4126_s3 + $0x10] ss:$0 sps:$4 sm:$0x33]  }
  0x8c   : > { %v962_v25 = vpop.permute.xlu1 %961  ;;  %v937_v9 = vpop.permute.xlu0 %936 }
  0x8e   : > { %1419 = vrot.lane.b32.xlu1 %v1412_v26, %s2640_s29  ;;  %513 = vrot.lane.b32.xlu0 %v487_v3, %s2646_s19  ;;  %v1568_v26 = vrot.slane %v1387_v53, 2 }
  0x90   : > { %v1026_v54 = vpop.permute.xlu1 %1025  ;;  %v809_v27 = vpop.permute.xlu0 %808 }
  0x91   : > { %v1036_v49 = vsel %vm634_vm8, %v2721_v10, %v809_v27  ;;  %v1383_v10 = vshll.u32 %v3285_v12, 16 }
  0x92   : > { %1445 = vrot.lane.b32.xlu1 %v1438_v56, %s2639_s28  ;;  %535 = vrot.lane.b32.xlu0 %v526_v30, %s2642_s8  ;;  %v1046_v11 = vsel %vm645_vm9, %v1036_v49, %v828_v34  ;;  %v1543_v34 = vrot.slane %v3285_v12, 2  ;;  %v616_v56 = vrot.slane %v3251_v55, 3 }
  0x93   : > { %v1569_v1 = vrot.slane %v1383_v10, 3  ;;  %v1056_v45 = vsel %vm656_vm10, %v1046_v11, %v854_v47  ;;  %v3366_v11 = vrot.slane %v387_v50, 1  ;;  %v1607_v50 = vrot.slane %v3285_v12, 3 }
  0x94   : > { %v3319_v44 = vpop.permute.xlu1 %829  ;;  %v1005_v19 = vpop.permute.xlu0 %1004  ;;  %v1544_v51 = vsel %vm521_vm1, %v1541_v23, %v1543_v34  ;;  %v3369_v23 = vcombine.low %v3245_v46, %v332_v52 }
  0x95   : > { %v3351_v27 = vor.u32 %v1569_v1, %v1568_v26  ;;  %v1329_v1 = vld [vmem:[%s2874_s24 + $0x20] sm:$0xf] }
  0x96   : > { %1507 = vrot.lane.b32.xlu1 %v1481_v16, %s2646_s19  ;;  %560 = vrot.lane.b32.xlu0 %v551_v7, %s2641_s7  ;;  %v492_v26 = vshll.u32 %v3369_v23, 16 }
  0x98   : > { %v916_v3 = vpop.permute.xlu1 %915  ;;  %v811_v30 = vpop.permute.xlu0 %810 }
  0x99   : > { %v1066_v48 = vsel %vm667_vm11, %v1056_v45, %v916_v3  ;;  %v1608_v3 = vsel %vm612_vm2, %v1605_v20, %v1607_v50  ;;  %v1381_v45 = vor.u32 %v1379_v40, %v3234_v35  ;;  %v444_v20 = vrot.slane %v3369_v23, 1  ;;  %v2622_v40 = vld [vmem:[%s4126_s3] sm:$0xff]  }
  0x9a   : > { %v1076_v32 = vsel %vm678_vm12, %v1066_v48, %v937_v9  ;;  %1528 = vrot.lane.b32.xlu1 %v1519_v59, %s2642_s8  ;;  %604 = vrot.lane.b32.xlu0 %v579_v37, %s2645_s14  ;;  %v385_v9 = vor.u32 %v383_v28, %v3206_v4  ;;  %v1246_v4 = vsel %vm1143_vm6, %v2619_v39, 0  ;;  %v418_v59 = vrot.slane %v3251_v55, 1  ;;  %v3421_v35 = vld [vmem:[%s2858_s18 + $0x24] sm:$0xf] }
  0x9b   : > { %v1086_v47 = vsel %vm689_vm13, %v1076_v32, %v962_v25  ;;  %v617_v25 = vsel %vm612_vm2, %v614_v57, %v616_v56  ;;  %v1571_v57 = vsel %vm568_vm4, %v3211_v6, %v3351_v27  ;;  %v489_v37 = vshrl.u32 %v3369_v23, 16  ;;  %v2620_v6 = vld [vmem:[%s4126_s3 + $0x8] sm:$0xff]  }
  0x9c   : > { %v3356_v49 = vpop.permute.xlu1 %855  ;;  %v3358_v7 = vpop.permute.xlu0 %804  ;;  %v1096_v16 = vsel %vm700_vm14, %v1086_v47, %v1005_v19  ;;  %v3404_v48 = vrot.slane %v1383_v10, 1  ;;  %v3407_v39 = vcombine.low %v3278_v41, %v1329_v1  ;;  %v1413_v41 = vrot.slane %v3285_v12, 1 }
  0x9d   : > { %v1106_v28 = vsel %vm711_vm15, %v1096_v16, %v1026_v54  ;;  %v390_v54 = vsel %vm4131_vm3, %v385_v9, %v3366_v11  ;;  %v491_v9 = vrot.slane %v489_v37, 1  ;;  %v494_v16 = vrot.slane %v492_v26, 2 }
  0x9e   : > { %2468 = vmatmul.mubr.msk.bf16.vlgmr.msra.gmra.mxu1 %vm1132_vm5, %v1106_v28  ;;  %1553 = vrot.lane.b32.xlu1 %v1544_v51, %s2641_s7  ;;  %v419_v51 = vsel %vm412_vm0, %v416_v38, %v418_v59  ;;  %v1386_v38 = vsel %vm4131_vm3, %v1381_v45, %v3404_v48  ;;  %v1483_v10 = vshrl.u32 %v3407_v39, 16  ;;  %v1038_v28 = vsel %vm634_vm8, %v2708_v5, %v811_v30 }
  0x9f   : > { %626 = vrot.lane.b32.xlu0 %v617_v25, %s2643_s11  ;;  %2471 = vmatprep.mubr.msk.bf16.mxu1 %vm2648_vm7, %v2647_v18  ;;  %v1486_v25 = vshll.u32 %v3407_v39, 16  ;;  %v445_v37 = vsel %vm412_vm0, %v442_v58, %v444_v20  ;;  %v3441_v26 = vor.u32 %v494_v16, %v491_v9  ;;  %v1414_v5 = vsel %vm412_vm0, %v1411_v43, %v1413_v41 }
  0xa0   : > { %v918_v46 = vpop.permute.xlu1 %917  ;;  %v3382_v19 = vpop.permute.xlu0 %823  ;;  %2480 = vmatpush3.bf16.msra.mxu1 %v1246_v4  ;;  %v1439_v30 = vrot.slane %v3407_v39, 1  ;;  %v527_v58 = vrot.slane %v3369_v23, 2  ;;  %vm4133_vm3 = vsmask.f32 6400  ;;  %v1032_v36 = vsel %vm634_vm8, %v2814_v60, %v3358_v7 }
  0xa1   : > { %2481 = vmatprep.subr.bf16.mxu1 %v2647_v18  ;;  %v1488_v45 = vrot.slane %v1486_v25, 2  ;;  %v496_v43 = vsel %vm4133_vm3, %v3262_v0, %v3441_v26 }
  0xa2   : > { %1596 = vrot.lane.b32.xlu1 %v1571_v57, %s2645_s14  ;;  %v1440_v0 = vsel %vm412_vm0, %v1437_v33, %v1439_v30 }
  0xa3   : > { %406 = vrot.lane.b32.xlu0 %v390_v54, %s2644_s12  ;;  %v3434_v54 = vcombine.low %v332_v52, %v3421_v35  ;;  %v1048_v52 = vsel %vm645_vm9, %v1038_v28, %v3319_v44 }
  0xa4   : > { %v939_v32 = vpop.permute.xlu1 %938  ;;  %v3409_v47 = vpop.permute.xlu0 %849  ;;  %2482 = vmatpush3.bf16.msra.mxu1 %v2620_v6  ;;  %v3454_v6 = vld [vmem:[%s2874_s24 + $0x24] sm:$0xf] }
  0xa5   : > { %2483 = vmatprep.subr.bf16.mxu1 %v2647_v18  ;;  %v399_v44 = vshrl.u32 %v3434_v54, 16 }
  0xa6   : > { %1617 = vrot.lane.b32.xlu1 %v1608_v3, %s2643_s11  ;;  %v1485_v3 = vrot.slane %v1483_v10, 1  ;;  %v3468_v10 = vcombine.low %v1329_v1, %v3454_v6 }
  0xa7   : > { %426 = vrot.lane.b32.xlu0 %v419_v51, %s2640_s29  ;;  %v1058_v51 = vsel %vm656_vm10, %v1048_v52, %v3356_v49 }
  0xa8   : > { %v964_v4 = vpop.permute.xlu1 %963  ;;  %v912_v57 = vpop.permute.xlu0 %911  ;;  %2484 = vmatpush3.bf16.msra.mxu1 %v2622_v40  ;;  %v395_v40 = vshll.u32 %v3434_v54, 16 }
  0xaa   : > { %1402 = vrot.lane.b32.xlu1 %v1386_v38, %s2644_s12  ;;  %v1068_v38 = vsel %vm667_vm11, %v1058_v51, %v918_v46  ;;  %v528_v46 = vsel %vm521_vm1, %v525_v24, %v527_v58  ;;  %v581_v52 = vrot.slane %v395_v40, 3  ;;  %v1520_v24 = vrot.slane %v3407_v39, 2 }
  0xab   : > { %452 = vrot.lane.b32.xlu0 %v445_v37, %s2639_s28  ;;  %v1078_v28 = vsel %vm678_vm12, %v1068_v38, %v939_v32  ;;  %v3482_v32 = vor.u32 %v1488_v45, %v1485_v3  ;;  %v552_v37 = vrot.slane %v3434_v54, 2  ;;  %v1042_v3 = vsel %vm645_vm9, %v1032_v36, %v3382_v19 }
  0xac   : > { %v1007_v9 = vpop.permute.xlu1 %1006  ;;  %v933_v16 = vpop.permute.xlu0 %932  ;;  %v1088_v49 = vsel %vm689_vm13, %v1078_v28, %v964_v4  ;;  %v1391_v51 = vshll.u32 %v3468_v10, 16  ;;  %v1052_v60 = vsel %vm656_vm10, %v1042_v3, %v3409_v47  ;;  %v2623_v28 = vld [vmem:[%s4126_s3 + $0x38] ss:$0 sps:$4 sm:$0x33]  }
  0xad   : > { %v1098_v1 = vsel %vm700_vm14, %v1088_v49, %v1007_v9  ;;  %v1490_v45 = vsel %vm4133_vm3, %v3298_v17, %v3482_v32  ;;  %v1395_v9 = vshrl.u32 %v3468_v10, 16  ;;  %v553_v19 = vsel %vm521_vm1, %v550_v13, %v552_v37 }
  0xae   : > { %1421 = vrot.lane.b32.xlu1 %v1414_v5, %s2640_s29  ;;  %v580_v5 = vrot.slane %v399_v44, 2  ;;  %v1062_v38 = vsel %vm667_vm11, %v1052_v60, %v912_v57  ;;  %v1545_v49 = vrot.slane %v3468_v10, 2  ;;  %v1521_v13 = vsel %vm521_vm1, %v1518_v42, %v1520_v24 }
  0xaf   : > { %515 = vrot.lane.b32.xlu0 %v496_v43, %s2646_s19  ;;  %v1072_v47 = vsel %vm678_vm12, %v1062_v38, %v933_v16  ;;  %v1572_v57 = vrot.slane %v1395_v9, 2  ;;  %v1737_v42 = vsel %vm1143_vm6, %v2623_v28, 0  ;;  %v393_v60 = vor.u32 %v391_v15, %v3366_v11 }
  0xb0   : > { %v1028_v25 = vpop.permute.xlu1 %1027  ;;  %v958_v4 = vpop.permute.xlu0 %957  ;;  %v3514_v17 = vor.u32 %v581_v52, %v580_v5  ;;  %v618_v5 = vrot.slane %v3434_v54, 3  ;;  %vm4134_vm6 = vsmask.f32 7424  ;;  %v420_v38 = vrot.slane %v3434_v54, 1 }
  0xb1   : > { %v1108_v33 = vsel %vm711_vm15, %v1098_v1, %v1028_v25  ;;  %vm4135_vm3 = vmmov %vm4134_vm6 }
  0xb2   : > { %2472 = vmatmul.mubr.msk.bf16.gmra.mxu1 %vm1132_vm5, %v1108_v33  ;;  %1447 = vrot.lane.b32.xlu1 %v1440_v0, %s2639_s28  ;;  %v1082_v0 = vsel %vm689_vm13, %v1072_v47, %v958_v4  ;;  %v583_v4 = vsel %vm568_vm4, %v3315_v62, %v3514_v17  ;;  %v1546_v33 = vsel %vm521_vm1, %v1543_v34, %v1545_v49  ;;  %v3564_v34 = vrot.slane %v395_v40, 1 }
  0xb3   : > { %537 = vrot.lane.b32.xlu0 %v528_v46, %s2642_s8  ;;  %2475 = vmatprep.mubr.msk.bf16.mxu1 %vm2648_vm7, %v2647_v18  ;;  %v1573_v46 = vrot.slane %v1391_v51, 3 }
  0xb4   : > { %v1001_v7 = vpop.permute.xlu1 %1000  ;;  %v3507_v43 = vpop.permute.xlu0 %812  ;;  %v398_v40 = vsel %vm4134_vm6, %v393_v60, %v3564_v34  ;;  %vm4136_vm6 = vsmask.f32 6400 }
  0xb5   : > { %v1092_v16 = vsel %vm700_vm14, %v1082_v0, %v1001_v7  ;;  %v3550_v62 = vor.u32 %v1573_v46, %v1572_v57  ;;  %v3567_v7 = vcombine.low %v3421_v35, %v334_v29  ;;  %v1331_v0 = vld [vmem:[%s2874_s24 + $0x28] sm:$0xf]  ;;  %v1389_v57 = vor.u32 %v1387_v53, %v3404_v48 }
  0xb6   : > { %1509 = vrot.lane.b32.xlu1 %v1490_v45, %s2646_s19  ;;  %v619_v45 = vsel %vm612_vm2, %v616_v56, %v618_v5  ;;  %v1609_v56 = vrot.slane %v3468_v10, 3  ;;  %v3601_v46 = vrot.slane %v1391_v51, 1  ;;  %v1415_v53 = vrot.slane %v3468_v10, 1 }
  0xb7   : > { %562 = vrot.lane.b32.xlu0 %v553_v19, %s2641_s7  ;;  %v2624_v19 = vld [vmem:[%s4126_s3 + $0x30] sm:$0xff]   ;;  %v1575_v15 = vsel %vm568_vm4, %v3351_v27, %v3550_v62  ;;  %v498_v28 = vshrl.u32 %v3567_v7, 16  ;;  %v501_v47 = vshll.u32 %v3567_v7, 16  ;;  %v2627_v27 = vld [vmem:[%s4126_s3 + $0x28] sm:$0xff]  }
  0xb8   : > { %v1022_v1 = vpop.permute.xlu1 %1021  ;;  %v3533_v25 = vpop.permute.xlu0 %831  ;;  %v1394_v48 = vsel %vm4135_vm3, %v1389_v57, %v3601_v46 }
  0xb9   : > { %v1102_v52 = vsel %vm711_vm15, %v1092_v16, %v1022_v1  ;;  %v3604_v16 = vcombine.low %v3454_v6, %v1331_v0 }
  0xba   : > { %1530 = vrot.lane.b32.xlu1 %v1521_v13, %s2642_s8  ;;  %2460 = vmatmul.mubr.msk.bf16.vlgmr.msra.gmra.mxu0 %vm1132_vm5, %v1102_v52  ;;  %v1610_v13 = vsel %vm612_vm2, %v1607_v50, %v1609_v56  ;;  %v421_v52 = vsel %vm412_vm0, %v418_v59, %v420_v38  ;;  %v500_v50 = vrot.slane %v498_v28, 1  ;;  %v1040_v28 = vsel %vm634_vm8, %v2716_v8, %v3507_v43 }
  0xbb   : > { %606 = vrot.lane.b32.xlu0 %v583_v4, %s2645_s14  ;;  %2463 = vmatprep.mubr.msk.bf16.mxu0 %vm2648_vm7, %v2647_v18  ;;  %v1492_v6 = vshrl.u32 %v3604_v16, 16  ;;  %v1495_v59 = vshll.u32 %v3604_v16, 16 }
  0xbc   : > { %v858_v36 = vpop.permute.xlu1 %857  ;;  %v3554_v3 = vpop.permute.xlu0 %806  ;;  %2506 = vmatpush3.bf16.msra.mxu0 %v1737_v42  ;;  %v446_v42 = vrot.slane %v3567_v7, 1 }
  0xbd   : > { %2507 = vmatprep.subr.bf16.mxu0 %v2647_v18  ;;  %v1497_v57 = vrot.slane %v1495_v59, 2 }
  0xbe   : > { %1555 = vrot.lane.b32.xlu1 %v1546_v33, %s2641_s7  ;;  %v503_v33 = vrot.slane %v501_v47, 2  ;;  %v1416_v47 = vsel %vm412_vm0, %v1413_v41, %v1415_v53 }
  0xbf   : > { %628 = vrot.lane.b32.xlu0 %v619_v45, %s2643_s11  ;;  %v3613_v45 = vld [vmem:[%s2858_s18 + $0x2c] sm:$0xf] }
  0xc0   : > { %v920_v11 = vpop.permute.xlu1 %919  ;;  %v3579_v35 = vpop.permute.xlu0 %825  ;;  %2508 = vmatpush3.bf16.msra.mxu0 %v2624_v19  ;;  %v447_v19 = vsel %vm412_vm0, %v444_v20, %v446_v42  ;;  %v529_v20 = vrot.slane %v3567_v7, 2 }
  0xc1   : > { %2509 = vmatprep.subr.bf16.mxu0 %v2647_v18 }
  0xc2   : > { %1598 = vrot.lane.b32.xlu1 %v1575_v15, %s2645_s14  ;;  %v3627_v15 = vor.u32 %v503_v33, %v500_v50 }
  0xc3   : > { %408 = vrot.lane.b32.xlu0 %v398_v40, %s2644_s12  ;;  %v3630_v40 = vcombine.low %v334_v29, %v3613_v45  ;;  %v1441_v29 = vrot.slane %v3604_v16, 1 }
  0xc4   : > { %v941_v1 = vpop.permute.xlu1 %940  ;;  %v852_v4 = vpop.permute.xlu0 %851  ;;  %2510 = vmatpush3.bf16.msra.mxu0 %v2627_v27  ;;  %v1050_v27 = vsel %vm645_vm9, %v1040_v28, %v3533_v25  ;;  %v505_v50 = vsel %vm4136_vm6, %v3441_v26, %v3627_v15 }
  0xc5   : > { %v1060_v8 = vsel %vm656_vm10, %v1050_v27, %v858_v36  ;;  %v585_v41 = vshrl.u32 %v3630_v40, 16  ;;  %v588_v33 = vshll.u32 %v3630_v40, 16  ;;  %v530_v36 = vsel %vm521_vm1, %v527_v58, %v529_v20 }
  0xc6   : > { %1619 = vrot.lane.b32.xlu1 %v1610_v13, %s2643_s11  ;;  %v1494_v13 = vrot.slane %v1492_v6, 1  ;;  %v1070_v25 = vsel %vm667_vm11, %v1060_v8, %v920_v11  ;;  %v1442_v11 = vsel %vm412_vm0, %v1439_v30, %v1441_v29  ;;  %v554_v58 = vrot.slane %v3630_v40, 2  ;;  %vm4137_vm0 = vmmov %vm4136_vm6 }
  0xc7   : > { %428 = vrot.lane.b32.xlu0 %v421_v52, %s2640_s29  ;;  %v1034_v8 = vsel %vm634_vm8, %v2816_v61, %v3554_v3  ;;  %v1522_v30 = vrot.slane %v3604_v16, 2  ;;  %v620_v39 = vrot.slane %v3630_v40, 3  ;;  %vm4138_vm3 = vmmov %vm4137_vm0 }
  0xc8   : > { %v966_v51 = vpop.permute.xlu1 %965  ;;  %v914_v60 = vpop.permute.xlu0 %913  ;;  %v3670_v6 = vor.u32 %v1497_v57, %v1494_v13  ;;  %vm4139_vm6 = vmmov %vm4137_vm0 }
  0xca   : > { %1404 = vrot.lane.b32.xlu1 %v1394_v48, %s2644_s12  ;;  %v3653_v48 = vld [vmem:[%s2874_s24 + $0x2c] sm:$0xf]  ;;  %v1499_v13 = vsel %vm4137_vm0, %v3482_v32, %v3670_v6 }
  0xcb   : > { %454 = vrot.lane.b32.xlu0 %v447_v19, %s2639_s28  ;;  %v1080_v19 = vsel %vm678_vm12, %v1070_v25, %v941_v1  ;;  %v3673_v1 = vcombine.low %v1331_v0, %v3653_v48  ;;  %v1044_v0 = vsel %vm645_vm9, %v1034_v8, %v3579_v35  ;;  %v555_v35 = vsel %vm521_vm1, %v552_v37, %v554_v58 }
  0xcc   : > { %v1009_v43 = vpop.permute.xlu1 %1008  ;;  %v935_v52 = vpop.permute.xlu0 %934  ;;  %v1090_v26 = vsel %vm689_vm13, %v1080_v19, %v966_v51  ;;  %v587_v51 = vrot.slane %v585_v41, 2  ;;  %v1054_v61 = vsel %vm656_vm10, %v1044_v0, %v852_v4  ;;  %v1523_v4 = vsel %vm521_vm1, %v1520_v24, %v1522_v30 }
  0xcd   : > { %v1100_v59 = vsel %vm700_vm14, %v1090_v26, %v1009_v43  ;;  %v1577_v57 = vshrl.u32 %v3673_v1, 16  ;;  %v1580_v43 = vshll.u32 %v3673_v1, 16  ;;  %v1064_v32 = vsel %vm667_vm11, %v1054_v61, %v914_v60 }
  0xce   : > { %1423 = vrot.lane.b32.xlu1 %v1416_v47, %s2640_s29  ;;  %v590_v47 = vrot.slane %v588_v33, 3  ;;  %v1074_v33 = vsel %vm678_vm12, %v1064_v32, %v935_v52  ;;  %v1547_v37 = vrot.slane %v3673_v1, 2 }
  0xcf   : > { %517 = vrot.lane.b32.xlu0 %v505_v50, %s2646_s19  ;;  %v1579_v19 = vrot.slane %v1577_v57, 2  ;;  %v1397_v57 = vor.u32 %v1395_v9, %v3601_v46 }
  0xd0   : > { %v1030_v23 = vpop.permute.xlu1 %1029  ;;  %v960_v28 = vpop.permute.xlu0 %959  ;;  %v3700_v41 = vor.u32 %v590_v47, %v587_v51  ;;  %v621_v51 = vsel %vm612_vm2, %v618_v5, %v620_v39  ;;  %v401_v47 = vor.u32 %v399_v44, %v3564_v34  ;;  %v2307_v5 = vcombine.low %v3613_v45, %v3613_v45 }
  0xd1   : > { %v1110_v27 = vsel %vm711_vm15, %v1100_v59, %v1030_v23  ;;  %v1084_v25 = vsel %vm689_vm13, %v1074_v33, %v960_v28  ;;  %v1548_v59 = vsel %vm521_vm1, %v1545_v49, %v1547_v37  ;;  %v2354_v45 = vcombine.low %v3653_v48, %v3653_v48 }
  0xd2   : > { %1449 = vrot.lane.b32.xlu1 %v1442_v11, %s2639_s28  ;;  %2476 = vmatmul.mubr.msk.bf16.gmra.mxu1 %vm1132_vm5, %v1110_v27  ;;  %v592_v11 = vsel %vm568_vm4, %v3514_v17, %v3700_v41  ;;  %v1611_v27 = vrot.slane %v3673_v1, 3  ;;  %v507_v34 = vshll.u32 %v2307_v5, 16  ;;  %v531_v9 = vrot.slane %v2307_v5, 2 }
  0xd3   : > { %539 = vrot.lane.b32.xlu0 %v530_v36, %s2642_s8  ;;  %2485 = vmatprep.mubr.msk.bf16.mxu1 %vm2648_vm7, %v2647_v18  ;;  %v1582_v36 = vrot.slane %v1580_v43, 3 }
  0xd4   : > { %v1003_v3 = vpop.permute.xlu1 %1002  ;;  %v403_v50 = vpop.permute.xlu0 %402 }
  0xd5   : > { %v1094_v60 = vsel %vm700_vm14, %v1084_v25, %v1003_v3  ;;  %v3727_v23 = vor.u32 %v1582_v36, %v1579_v19  ;;  %v509_v3 = vrot.slane %v507_v34, 2 }
  0xd6   : > { %1511 = vrot.lane.b32.xlu1 %v1499_v13, %s2646_s19 }
  0xd7   : > { %564 = vrot.lane.b32.xlu0 %v555_v35, %s2641_s7  ;;  %v1584_v49 = vsel %vm568_vm4, %v3550_v62, %v3727_v23  ;;  %v1612_v62 = vsel %vm612_vm2, %v1609_v56, %v1611_v27  ;;  %v3764_v56 = vld [vmem:[%s2858_s18 + $0x30] ss:$0 sps:$4 sm:$0x33]   ;;  %v636_v35 = vsel %vm634_vm8, %v3002_v2, %v403_v50 }
  0xd8   : > { %v1024_v26 = vpop.permute.xlu1 %1023  ;;  %v423_v52 = vpop.permute.xlu0 %422  ;;  %v594_v2 = vshrl.u32 %v3764_v56, 16  ;;  %v597_v50 = vshll.u32 %v3764_v56, 16  ;;  %v622_v34 = vrot.slane %v3764_v56, 3 }
  0xd9   : > { %v1104_v24 = vsel %vm711_vm15, %v1094_v60, %v1024_v26  ;;  %v647_v32 = vsel %vm645_vm9, %v636_v35, %v423_v52 }
  0xda   : > { %1532 = vrot.lane.b32.xlu1 %v1523_v4, %s2642_s8  ;;  %2464 = vmatmul.mubr.msk.bf16.gmra.mxu0 %vm1132_vm5, %v1104_v24  ;;  %v510_v4 = vsel %vm4138_vm3, %v3627_v15, %v509_v3  ;;  %v556_v15 = vrot.slane %v3764_v56, 2  ;;  %v596_v24 = vrot.slane %v594_v2, 2 }
  0xdb   : > { %608 = vrot.lane.b32.xlu0 %v592_v11, %s2645_s14  ;;  %2511 = vmatprep.mubr.msk.bf16.mxu0 %vm2648_vm7, %v2647_v18  ;;  %v532_v11 = vsel %vm521_vm1, %v529_v20, %v531_v9  ;;  %v623_v9 = vsel %vm612_vm2, %v620_v39, %v622_v34 }
  0xdc   : > { %v1399_v17 = vpop.permute.xlu1 %1398  ;;  %v449_v28 = vpop.permute.xlu0 %448  ;;  %v557_v20 = vsel %vm521_vm1, %v554_v58, %v556_v15 }
  0xdd   : > { %v658_v46 = vsel %vm656_vm10, %v647_v32, %v449_v28  ;;  %v2628_v28 = vld [vmem:[%s2874_s24 + $0x30] ss:$0 sps:$4 sm:$0x33]  }
  0xde   : > { %1557 = vrot.lane.b32.xlu1 %v1548_v59, %s2641_s7  ;;  %v599_v59 = vrot.slane %v597_v50, 3  ;;  %v1586_v5 = vshrl.u32 %v2628_v28, 16 }
  0xdf   : > { %630 = vrot.lane.b32.xlu0 %v621_v51, %s2643_s11  ;;  %v1626_v51 = vsel %vm634_vm8, %v3031_v63, %v1399_v17 }
  0xe0   : > { %v1418_v8 = vpop.permute.xlu1 %1417  ;;  %v512_v0 = vpop.permute.xlu0 %511  ;;  %v1588_v3 = vrot.slane %v1586_v5, 2 }
  0xe1   : > { %v669_v25 = vsel %vm667_vm11, %v658_v46, %v512_v0  ;;  %v600_v0 = vor.u32 %v599_v59, %v596_v24 }
  0xe2   : > { %1600 = vrot.lane.b32.xlu1 %v1584_v49, %s2645_s14  ;;  %v1636_v49 = vsel %vm645_vm9, %v1626_v51, %v1418_v8  ;;  %v1589_v8 = vshll.u32 %v2628_v28, 16 }
  0xe3   : > { %410 = vrot.lane.b32.xlu0 %v401_v47, %s2644_s12  ;;  %v1524_v47 = vrot.slane %v2354_v45, 2 }
  0xe4   : > { %v1444_v13 = vpop.permute.xlu1 %1443  ;;  %v534_v44 = vpop.permute.xlu0 %533  ;;  %v1591_v35 = vrot.slane %v1589_v8, 3 }
  0xe5   : > { %v680_v19 = vsel %vm678_vm12, %v669_v25, %v534_v44  ;;  %v1646_v63 = vsel %vm656_vm10, %v1636_v49, %v1444_v13  ;;  %v1525_v58 = vsel %vm521_vm1, %v1522_v30, %v1524_v47  ;;  %v1549_v13 = vrot.slane %v2628_v28, 2 }
  0xe6   : > { %1621 = vrot.lane.b32.xlu1 %v1612_v62, %s2643_s11  ;;  %v1613_v30 = vrot.slane %v2628_v28, 3 }
  0xe7   : > { %430 = vrot.lane.b32.xlu0 %v420_v38, %s2640_s29  ;;  %v1501_v38 = vshll.u32 %v2354_v45, 16  ;;  %v1550_v16 = vsel %vm521_vm1, %v1547_v37, %v1549_v13 }
  0xe8   : > { %v1506_v43 = vpop.permute.xlu1 %1505  ;;  %v559_v61 = vpop.permute.xlu0 %558  ;;  %v1614_v46 = vsel %vm612_vm2, %v1611_v27, %v1613_v30 }
  0xe9   : > { %v1503_v36 = vrot.slane %v1501_v38, 2  ;;  %v1656_v62 = vsel %vm667_vm11, %v1646_v63, %v1506_v43  ;;  %v601_v43 = vsel %vm568_vm4, %v3700_v41, %v600_v0  ;;  %v1592_v38 = vor.u32 %v1591_v35, %v1588_v3 }
  0xea   : > { %1406 = vrot.lane.b32.xlu1 %v1397_v57, %s2644_s12 }
  0xeb   : > { %456 = vrot.lane.b32.xlu0 %v446_v42, %s2639_s28  ;;  %v691_v42 = vsel %vm689_vm13, %v680_v19, %v559_v61  ;;  %v1504_v7 = vsel %vm4139_vm6, %v3670_v6, %v1503_v36 }
  0xec   : > { %v1527_v48 = vpop.permute.xlu1 %1526  ;;  %v603_v33 = vpop.permute.xlu0 %602 }
  0xed   : > { %v702_v60 = vsel %vm700_vm14, %v691_v42, %v603_v33  ;;  %v1666_v44 = vsel %vm678_vm12, %v1656_v62, %v1527_v48  ;;  %v1593_v33 = vsel %vm568_vm4, %v3727_v23, %v1592_v38 }
  0xee   : > { %1425 = vrot.lane.b32.xlu1 %v1415_v53, %s2640_s29 }
  0xef   : > { %519 = vrot.lane.b32.xlu0 %v510_v4, %s2646_s19 }
  0xf0   : > { %v1552_v26 = vpop.permute.xlu1 %1551  ;;  %v625_v52 = vpop.permute.xlu0 %624 }
  0xf1   : > { %v713_v53 = vsel %vm711_vm15, %v702_v60, %v625_v52  ;;  %v1676_v6 = vsel %vm689_vm13, %v1666_v44, %v1552_v26 }
  0xf2   : > { %1451 = vrot.lane.b32.xlu1 %v1441_v29, %s2639_s28  ;;  %2486 = vmatmul.mubr.msk.bf16.vlgmr.msra.gmra.mxu1 %vm1132_vm5, %v713_v53  ;;  %s2045_s28 = ssub.s32 0, %s2691_s22 }
  0xf3   : > { %541 = vrot.lane.b32.xlu0 %v532_v11, %s2642_s8  ;;  %2489 = vmatprep.mubr.msk.bf16.mxu1 %vm2648_vm7, %v2647_v18  ;;  %s2380_s29 = smin.u32 %s2691_s22, %s2045_s28 }
  0xf4   : > { %v1595_v29 = vpop.permute.xlu1 %1594  ;;  %v405_v17 = vpop.permute.xlu0 %404  ;;  %2629 = sdivrem.u32 %s2380_s29, 10 }
  0xf5   : > { %v1686_v57 = vsel %vm700_vm14, %v1676_v6, %v1595_v29  ;;  %v638_v50 = vsel %vm634_vm8, %v3023_v31, %v405_v17 }
  0xf6   : > { %1513 = vrot.lane.b32.xlu1 %v1504_v7, %s2646_s19 }
  0xf7   : > { %566 = vrot.lane.b32.xlu0 %v557_v20, %s2641_s7 }
  0xf8   : > { %v1616_v45 = vpop.permute.xlu1 %1615  ;;  %v425_v61 = vpop.permute.xlu0 %424 }
  0xf9   : > { %v1696_v32 = vsel %vm711_vm15, %v1686_v57, %v1616_v45  ;;  %v649_v1 = vsel %vm645_vm9, %v638_v50, %v425_v61 }
  0xfa   : > { %1534 = vrot.lane.b32.xlu1 %v1525_v58, %s2642_s8  ;;  %2512 = vmatmul.mubr.msk.bf16.vlgmr.msra.gmra.mxu0 %vm1132_vm5, %v1696_v32 }
  0xfb   : > { %610 = vrot.lane.b32.xlu0 %v601_v43, %s2645_s14  ;;  %2515 = vmatprep.mubr.msk.bf16.mxu0 %vm2648_vm7, %v2647_v18 }
  0xfc   : > { %v1401_v56 = vpop.permute.xlu1 %1400  ;;  %v451_v41 = vpop.permute.xlu0 %450 }
  0xfd   : > { %v660_v19 = vsel %vm656_vm10, %v649_v1, %v451_v41  ;;  %v1628_v52 = vsel %vm634_vm8, %v3053_v14, %v1401_v56  ;;  %s2630_s18 = spop.drf %2629 }
  0xfe   : > { %1559 = vrot.lane.b32.xlu1 %v1550_v16, %s2641_s7  ;;  %s3893_s7 = scalar_select %p312_p6, %s2691_s22, 19 }
  0xff   : > { %632 = vrot.lane.b32.xlu0 %v623_v9, %s2643_s11  ;;  %s2049_s19 = ssub.s32 0, %s2630_s18 }
 0x100   : > { %v1420_v37 = vpop.permute.xlu1 %1419  ;;  %v514_v48 = vpop.permute.xlu0 %513  ;;  %s2540_s8 = smul.u32 52, %s3893_s7  ;;  %s4150_s19 = smov (!%p2044_p7, %s2049_s19), %s2630_s18 }
 0x101   : > { %v671_v42 = vsel %vm667_vm11, %v660_v19, %v514_v48  ;;  %v1638_v11 = vsel %vm645_vm9, %v1628_v52, %v1420_v37  ;;  %p2382_p8 = scmp.lt.s32.totalorder %s4150_s19, 0  ;;  %s2055_s22 = sadd.s32 10, %s4150_s19 }
 0x102   : > { %1623 = vrot.lane.b32.xlu1 %v1614_v46, %s2643_s11  ;;  %s319_s17 = scalar_lea.vmem %s4128_s5, %s3893_s7  ;;  %s322_s25 = scalar_lea.vmem %s4129_s6, %s3893_s7 }
 0x103   : > { %1602 = vrot.lane.b32.xlu0 %v1593_v33, %s2645_s14  ;;  %s3899_s14 = scalar_lea.vmem %s4127_s4, %s2540_s8  ;;  %s4152_s22 = smov (!%p2382_p8, %s2055_s22), %s4150_s19 }
 0x104   : > { %v1446_v40 = vpop.permute.xlu1 %1445  ;;  %v536_v39 = vpop.permute.xlu0 %535  ;;  %p2067_p9 = scmp.ge.s32.totalorder %s4152_s22, 1  ;;  %p2068_p10 = scmp.le.s32.totalorder %s4152_s22, 8 }
 0x105   : > { %v682_v23 = vsel %vm678_vm12, %v671_v42, %v536_v39  ;;  %v1648_v24 = vsel %vm656_vm10, %v1638_v11, %v1446_v40 }
 0x106   : > { %p3978_p11 = pnand %p2068_p10, %p2067_p9 }
 0x108   : > { %v1508_v4 = vpop.permute.xlu1 %1507  ;;  %v561_v2 = vpop.permute.xlu0 %560  ;;  %s2383_s13 = scalar_select %p3978_p11, 0, 1 }
 0x109   : > { %v693_v36 = vsel %vm689_vm13, %v682_v23, %v561_v2  ;;  %v1658_v28 = vsel %vm667_vm11, %v1648_v24, %v1508_v4 }
 0x10c   : > { %v1529_v25 = vpop.permute.xlu1 %1528  ;;  %v605_v27 = vpop.permute.xlu0 %604 }
 0x10d   : > { %v704_v60 = vsel %vm700_vm14, %v693_v36, %v605_v27  ;;  %v1668_v51 = vsel %vm678_vm12, %v1658_v28, %v1529_v25  ;;  %v2649_v25 = vmov 0  }
 0x10e   : > { %1872 = vst [vmem:[%s3899_s14 + $0x24] sm:$0x8] %v2649_v25 }
 0x110   : > { %v1554_v15 = vpop.permute.xlu1 %1553 }
 0x111   : > { %v627_v26 = vpop.permute.xlu0 %626  ;;  %v1678_v14 = vsel %vm689_vm13, %v1668_v51, %v1554_v15 }
 0x112   : > { %v715_v31 = vsel %vm711_vm15, %v704_v60, %v627_v26 }
 0x113   : > { %2490 = vmatmul.mubr.msk.bf16.gmra.mxu1 %vm1132_vm5, %v715_v31 }
 0x114   : > { %v1597_v59 = vpop.permute.xlu1 %1596  ;;  %2493 = vmatprep.mubr.msk.bf16.mxu1 %vm2648_vm7, %v2647_v18 }
 0x115   : > { %v407_v53 = vpop.permute.xlu0 %406  ;;  %v1688_v49 = vsel %vm700_vm14, %v1678_v14, %v1597_v59 }
 0x116   : > { %v640_v6 = vsel %vm634_vm8, %v3123_v22, %v407_v53 }
 0x118   : > { %v1618_v7 = vpop.permute.xlu1 %1617 }
 0x119   : > { %v1698_v20 = vsel %vm711_vm15, %v1688_v49, %v1618_v7  ;;  %v427_v47 = vpop.permute.xlu0 %426 }
 0x11a   : > { %2516 = vmatmul.mubr.msk.bf16.gmra.mxu0 %vm1132_vm5, %v1698_v20  ;;  %v651_v58 = vsel %vm645_vm9, %v640_v6, %v427_v47 }
 0x11b   : > { %2519 = vmatprep.mubr.msk.bf16.mxu0 %vm2648_vm7, %v2647_v18 }
 0x11c   : > { %v1403_v63 = vpop.permute.xlu1 %1402 }
 0x11d   : > { %v453_v29 = vpop.permute.xlu0 %452  ;;  %v1630_v16 = vsel %vm634_vm8, %v3153_v21, %v1403_v63 }
 0x11e   : > { %v662_v34 = vsel %vm656_vm10, %v651_v58, %v453_v29 }
 0x120   : > { %v1422_v17 = vpop.permute.xlu1 %1421 }
 0x121   : > { %v516_v0 = vpop.permute.xlu0 %515  ;;  %v1640_v30 = vsel %vm645_vm9, %v1630_v16, %v1422_v17 }
 0x122   : > { %v673_v45 = vsel %vm667_vm11, %v662_v34, %v516_v0 }
 0x124   : > { %v1448_v5 = vpop.permute.xlu1 %1447 }
 0x125   : > { %v538_v8 = vpop.permute.xlu0 %537  ;;  %v1650_v56 = vsel %vm656_vm10, %v1640_v30, %v1448_v5 }
 0x126   : > { %v684_v61 = vsel %vm678_vm12, %v673_v45, %v538_v8 }
 0x128   : > { %v1510_v62 = vpop.permute.xlu1 %1509 }
 0x129   : > { %v563_v44 = vpop.permute.xlu0 %562  ;;  %v1660_v9 = vsel %vm667_vm11, %v1650_v56, %v1510_v62 }
 0x12a   : > { %v695_v43 = vsel %vm689_vm13, %v684_v61, %v563_v44 }
 0x12c   : > { %v1531_v13 = vpop.permute.xlu1 %1530 }
 0x12d   : > { %v607_v57 = vpop.permute.xlu0 %606  ;;  %v1670_v46 = vsel %vm678_vm12, %v1660_v9, %v1531_v13 }
 0x12e   : > { %v706_v35 = vsel %vm700_vm14, %v695_v43, %v607_v57 }
 0x130   : > { %v1556_v3 = vpop.permute.xlu1 %1555 }
 0x131   : > { %v629_v32 = vpop.permute.xlu0 %628  ;;  %v1680_v21 = vsel %vm689_vm13, %v1670_v46, %v1556_v3 }
 0x132   : > { %v717_v22 = vsel %vm711_vm15, %v706_v35, %v629_v32 }
 0x133   : > { %2494 = vmatmul.mubr.msk.bf16.gmra.mxu1 %vm1132_vm5, %v717_v22 }
 0x134   : > { %v1599_v41 = vpop.permute.xlu1 %1598  ;;  %2497 = vmatprep.mubr.msk.bf16.mxu1 %vm2648_vm7, %v2647_v18 }
 0x135   : > { %v409_v38 = vpop.permute.xlu0 %408  ;;  %v1690_v37 = vsel %vm700_vm14, %v1680_v21, %v1599_v41 }
 0x136   : > { %v642_v23 = vsel %vm634_vm8, %v3251_v55, %v409_v38 }
 0x138   : > { %v1620_v48 = vpop.permute.xlu1 %1619 }
 0x139   : > { %v1700_v33 = vsel %vm711_vm15, %v1690_v37, %v1620_v48  ;;  %v429_v40 = vpop.permute.xlu0 %428 }
 0x13a   : > { %2520 = vmatmul.mubr.msk.bf16.gmra.mxu0 %vm1132_vm5, %v1700_v33  ;;  %v653_v36 = vsel %vm645_vm9, %v642_v23, %v429_v40 }
 0x13b   : > { %2523 = vmatprep.mubr.msk.bf16.mxu0 %vm2648_vm7, %v2647_v18 }
 0x13c   : > { %v1405_v39 = vpop.permute.xlu1 %1404 }
 0x13d   : > { %v455_v4 = vpop.permute.xlu0 %454  ;;  %v1632_v53 = vsel %vm634_vm8, %v3285_v12, %v1405_v39 }
 0x13e   : > { %v664_v60 = vsel %vm656_vm10, %v653_v36, %v455_v4 }
 0x140   : > { %v1424_v2 = vpop.permute.xlu1 %1423 }
 0x141   : > { %v518_v50 = vpop.permute.xlu0 %517  ;;  %v1642_v51 = vsel %vm645_vm9, %v1632_v53, %v1424_v2 }
 0x142   : > { %v675_v52 = vsel %vm667_vm11, %v664_v60, %v518_v50  ;;  %v1873_v60 = vlaneseq }
 0x144   : > { %v1450_v1 = vpop.permute.xlu1 %1449 }
 0x145   : > { %v540_v27 = vpop.permute.xlu0 %539  ;;  %v1652_v14 = vsel %vm656_vm10, %v1642_v51, %v1450_v1 }
 0x146   : > { %v686_v31 = vsel %vm678_vm12, %v675_v52, %v540_v27 }
 0x148   : > { %v1512_v19 = vpop.permute.xlu1 %1511 }
 0x149   : > { %v565_v42 = vpop.permute.xlu0 %564  ;;  %v1662_v7 = vsel %vm667_vm11, %v1652_v14, %v1512_v19 }
 0x14a   : > { %v697_v11 = vsel %vm689_vm13, %v686_v31, %v565_v42  ;;  %v3958_v31 = vshrl.u32 %v1873_v60, 7 }
 0x14c   : > { %v1533_v15 = vpop.permute.xlu1 %1532 }
 0x14d   : > { %v609_v26 = vpop.permute.xlu0 %608  ;;  %v1672_v47 = vsel %vm678_vm12, %v1662_v7, %v1533_v15 }
 0x14e   : > { %v708_v59 = vsel %vm700_vm14, %v697_v11, %v609_v26 }
 0x150   : > { %v1558_v24 = vpop.permute.xlu1 %1557 }
 0x151   : > { %v631_v28 = vpop.permute.xlu0 %630  ;;  %v1682_v63 = vsel %vm689_vm13, %v1672_v47, %v1558_v24  ;;  %v1875_v24 = vadd.s32 8, %v3958_v31 }
 0x152   : > { %v719_v55 = vsel %vm711_vm15, %v708_v59, %v631_v28  ;;  %v3965_v28 = vmul.u32.u64.low 3435973837, %v3958_v31  ;;  %v3966_v53 = vmul.u32.u64.high 3435973837, %v3958_v31, %v3965_v28 }
 0x153   : > { %2498 = vmatmul.mubr.msk.bf16.gmra.mxu1 %vm1132_vm5, %v719_v55  ;;  %v3970_v51 = vmul.u32.u64.low 3435973837, %v1875_v24  ;;  %v3971_v14 = vmul.u32.u64.high 3435973837, %v1875_v24, %v3970_v51 }
 0x154   : > { %v1601_v49 = vpop.permute.xlu1 %1600  ;;  %2501 = vmatprep.mubr.msk.bf16.mxu1 %vm2648_vm7, %v2647_v18  ;;  %v1890_v47 = vshrl.u32 %v3966_v53, 3 }
 0x155   : > { %v411_v20 = vpop.permute.xlu0 %410  ;;  %v1692_v12 = vsel %vm700_vm14, %v1682_v63, %v1601_v49  ;;  %v1901_v63 = vshrl.u32 %v3971_v14, 3 }
 0x156   : > { %v644_v3 = vsel %vm634_vm8, %v3434_v54, %v411_v20 }
 0x158   : > { %v1622_v29 = vpop.permute.xlu1 %1621 }
 0x159   : > { %v1702_v17 = vsel %vm711_vm15, %v1692_v12, %v1622_v29  ;;  %v431_v0 = vpop.permute.xlu0 %430  ;;  %v1891_v12 = vmul.u32 10, %v1890_v47  ;;  %v1902_v29 = vmul.u32 10, %v1901_v63 }
 0x15a   : > { %2524 = vmatmul.mubr.msk.bf16.gmra.mxu0 %vm1132_vm5, %v1702_v17  ;;  %v655_v35 = vsel %vm645_vm9, %v644_v3, %v431_v0 }
 0x15b   : > { %2527 = vmatprep.mubr.msk.bf16.mxu0 %vm2648_vm7, %v2647_v18  ;;  %v1892_v17 = vsub.s32 %v3958_v31, %v1891_v12  ;;  %v1903_v0 = vsub.s32 %v1875_v24, %v1902_v29 }
 0x15c   : > { %v1407_v5 = vpop.permute.xlu1 %1406 }
 0x15d   : > { %v457_v8 = vpop.permute.xlu0 %456  ;;  %v1634_v41 = vsel %vm634_vm8, %v3468_v10, %v1407_v5  ;;  %vm1994_vm2 = vcmp.ne.s32.totalorder %v1892_v17, 0  ;;  %vm2004_vm4 = vcmp.lt.s32.totalorder %v1892_v17, 0  ;;  %v2024_v5 = vadd.s32 10, %v1892_v17 }
 0x15e   : > { %v3926_v62 = vpop.f32.mrf.mxu1  ;;  %v666_v16 = vsel %vm656_vm10, %v655_v35, %v457_v8  ;;  %vm2005_vm7 = vcmp.lt.s32.totalorder %v1903_v0, 0  ;;  %vm2014_vm8 = vmand %vm2004_vm4, %vm1994_vm2  ;;  %v2025_v8 = vadd.s32 10, %v1903_v0  ;;  %v1877_v35 = vadd.s32 24, %v3958_v31 }
 0x160   : > { %v2469_v44 = vpop.f32.mrf.mxu1  ;;  %v1426_v6 = vpop.permute.xlu1 %1425 }
 0x161   : > { %v520_v58 = vpop.permute.xlu0 %519  ;;  %v1644_v46 = vsel %vm645_vm9, %v1634_v41, %v1426_v6  ;;  %v1876_v6 = vadd.s32 16, %v3958_v31 }
 0x162   : > { %v3928_v13 = vpop.f32.mrf.mxu1  ;;  %v677_v30 = vsel %vm667_vm11, %v666_v16, %v520_v58  ;;  %v2034_v58 = vsel %vm2014_vm8, %v2024_v5, %v1892_v17 }
 0x164   : > { %v2470_v34 = vpop.f32.mrf.mxu1  ;;  %v1452_v57 = vpop.permute.xlu1 %1451 }
 0x165   : > { %v542_v45 = vpop.permute.xlu0 %541  ;;  %v1654_v37 = vsel %vm656_vm10, %v1644_v46, %v1452_v57  ;;  %v3985_v34 = vstv %s2383_s13  ;;  %vm2057_vm10 = vcmp.lt.s32.totalorder %v2034_v58, 8 }
 0x166   : > { %v688_v56 = vsel %vm678_vm12, %v677_v30, %v542_v45 }
 0x168   : > { %v1514_v61 = vpop.permute.xlu1 %1513 }
 0x169   : > { %v567_v43 = vpop.permute.xlu0 %566  ;;  %v1664_v40 = vsel %vm667_vm11, %v1654_v37, %v1514_v61  ;;  %vm2073_vm11 = vcmp.eq.s32.totalorder %v3985_v34, 1 }
 0x16a   : > { %v699_v9 = vsel %vm689_vm13, %v688_v56, %v567_v43  ;;  %v3988_v43 = vmul.u32.u64.low 3435973837, %v1876_v6  ;;  %v3989_v3 = vmul.u32.u64.high 3435973837, %v1876_v6, %v3988_v43 }
 0x16b   : > { %v3996_v56 = vmul.u32.u64.low 3435973837, %v1877_v35  ;;  %v3997_v41 = vmul.u32.u64.high 3435973837, %v1877_v35, %v3996_v56 }
 0x16c   : > { %v1535_v32 = vpop.permute.xlu1 %1534  ;;  %v1912_v37 = vshrl.u32 %v3989_v3, 3 }
 0x16d   : > { %v611_v22 = vpop.permute.xlu0 %610  ;;  %v1674_v10 = vsel %vm678_vm12, %v1664_v40, %v1535_v32 }
 0x16e   : > { %v710_v54 = vsel %vm700_vm14, %v699_v9, %v611_v22 }
 0x170   : > { %v1560_v38 = vpop.permute.xlu1 %1559 }
 0x171   : > { %v633_v21 = vpop.permute.xlu0 %632  ;;  %v1684_v2 = vsel %vm689_vm13, %v1674_v10, %v1560_v38  ;;  %vm2074_vm13 = vmand %vm2057_vm10, %vm2073_vm11 }
 0x172   : > { %v721_v48 = vsel %vm711_vm15, %v710_v54, %v633_v21  ;;  %v3943_v33 = vpop.f32.mrf.mxu1  ;;  %v2384_v9 = vsel %vm2074_vm13, 1.0, %v2647_v18 }
 0x173   : > { %2502 = vmatmul.mubr.msk.bf16.gmra.mxu1 %vm1132_vm5, %v721_v48 }
 0x174   : > { %v2473_v39 = vpop.f32.mrf.mxu1  ;;  %v1624_v4 = vpop.permute.xlu1 %1623 }
 0x175   : > { %v1603_v50 = vpop.permute.xlu0 %1602 }
 0x176   : > { %v1694_v1 = vsel %vm700_vm14, %v1684_v2, %v1603_v50  ;;  %v3950_v25 = vpop.f32.mrf.mxu1  ;;  %v1913_v2 = vmul.u32 10, %v1912_v37  ;;  %v1878_v37 = vadd.s32 32, %v3958_v31 }
 0x177   : > { %v1704_v27 = vsel %vm711_vm15, %v1694_v1, %v1624_v4 }
 0x178   : > { %2528 = vmatmul.mubr.msk.bf16.gmra.mxu0 %vm1132_vm5, %v1704_v27  ;;  %v2474_v19 = vpop.f32.mrf.mxu1  ;;  %vm1995_vm5 = vcmp.ne.s32.totalorder %v1903_v0, 0 }
 0x179   : > { %vm2015_vm9 = vmand %vm2005_vm7, %vm1995_vm5  ;;  %v1923_v19 = vshrl.u32 %v3997_v41, 3 }
 0x17a   : > { %v1181_v42 = vpop.f32.mrf.mxu0  ;;  %v2035_v45 = vsel %vm2015_vm9, %v2025_v8, %v1903_v0 }
 0x17b   : > { %vm2058_vm12 = vcmp.lt.s32.totalorder %v2035_v45, 8 }
 0x17c   : > { %v2461_v23 = vpop.f32.mrf.mxu0  ;;  %vm2075_vm14 = vmand %vm2058_vm12, %vm2073_vm11 }
 0x17d   : > { %v2385_v21 = vsel %vm2075_vm14, 1.0, %v2647_v18  ;;  %v1914_v23 = vsub.s32 %v1876_v6, %v1913_v2 }
 0x17e   : > { %v3954_v36 = vpop.f32.mrf.mxu0 }
 0x17f   : > { %vm1996_vm15 = vcmp.ne.s32.totalorder %v1914_v23, 0  ;;  %vm2006_vm0 = vcmp.lt.s32.totalorder %v1914_v23, 0  ;;  %v2026_v60 = vadd.s32 10, %v1914_v23 }
 0x180   : > { %v2462_v15 = vpop.f32.mrf.mxu0  ;;  %vm2016_vm3 = vmand %vm2006_vm0, %vm1996_vm15 }
 0x192   : > { %v3956_v26 = vpop.f32.mrf.mxu1 }
 0x194   : > { %v2477_v52 = vpop.f32.mrf.mxu1 }
 0x195   : > { %v2036_v52 = vsel %vm2016_vm3, %v2026_v60, %v1914_v23 }
 0x196   : > { %v3960_v11 = vpop.f32.mrf.mxu1  ;;  %vm2059_vm5 = vcmp.lt.s32.totalorder %v2036_v52, 8 }
 0x197   : > { %vm2076_vm7 = vmand %vm2059_vm5, %vm2073_vm11 }
 0x198   : > { %v2478_v59 = vpop.f32.mrf.mxu1  ;;  %v2386_v47 = vsel %vm2076_vm7, 1.0, %v2647_v18 }
 0x19a   : > { %v3968_v55 = vpop.f32.mrf.mxu0 }
 0x19c   : > { %v2465_v49 = vpop.f32.mrf.mxu0 }
 0x19e   : > { %v3973_v7 = vpop.f32.mrf.mxu0 }
 0x1a0   : > { %v2466_v20 = vpop.f32.mrf.mxu0 }
 0x1b2   : > { %v1282_v44 = vpop.f32.mrf.mxu1 }
 0x1b3   : > { %v1283_v16 = vadd.f32 %v1282_v44, %v1181_v42 }
 0x1b4   : > { %v2487_v57 = vpop.f32.mrf.mxu1 }
 0x1b6   : > { %v1285_v61 = vpop.f32.mrf.mxu1 }
 0x1b7   : > { %v1286_v46 = vadd.f32 %v1285_v61, %v3954_v36  ;;  %v1924_v36 = vmul.u32 10, %v1923_v19 }
 0x1b8   : > { %v2488_v32 = vpop.f32.mrf.mxu1 }
 0x1b9   : > { %v1925_v15 = vsub.s32 %v1877_v35, %v1924_v36 }
 0x1ba   : > { %v1773_v22 = vpop.f32.mrf.mxu0 }
 0x1bb   : > { %v1812_v30 = vadd.f32 %v1773_v22, %v1283_v16  ;;  %vm1997_vm6 = vcmp.ne.s32.totalorder %v1925_v15, 0  ;;  %vm2007_vm2 = vcmp.lt.s32.totalorder %v1925_v15, 0  ;;  %v2027_v24 = vadd.s32 10, %v1925_v15 }
 0x1bc   : > { %v2513_v38 = vpop.f32.mrf.mxu0  ;;  %vm2017_vm4 = vmand %vm2007_vm2, %vm1997_vm6 }
 0x1bd   : > { %v2104_v48 = vmul.f32 %v2384_v9, %v1812_v30  ;;  %v2037_v53 = vsel %vm2017_vm4, %v2027_v24, %v1925_v15 }
 0x1be   : > { %v1776_v54 = vpop.f32.mrf.mxu0  ;;  %vm2060_vm8 = vcmp.lt.s32.totalorder %v2037_v53, 8 }
 0x1bf   : > { %v1813_v40 = vadd.f32 %v1776_v54, %v1286_v46  ;;  %v2132_v50 = vmul.f32 %v2104_v48, %v1812_v30  ;;  %vm2077_vm9 = vmand %vm2060_vm8, %vm2073_vm11 }
 0x1c0   : > { %v2514_v10 = vpop.f32.mrf.mxu0  ;;  %v2387_v5 = vsel %vm2077_vm9, 1.0, %v2647_v18 }
 0x1c1   : > { %v2409_v39 = vpack.c.bf16 %v1813_v40, %v1812_v30  ;;  %v2105_v4 = vmul.f32 %v2385_v21, %v1813_v40 }
 0x1c3   : > { %2410 = vst [vmem:[%s3899_s14] sm:$0xff] %v2409_v39   ;;  %v2114_v1 = vadd.f32 %v2105_v4, %v2104_v48  ;;  %v2133_v27 = vmul.f32 %v2105_v4, %v1813_v40  ;;  %v1879_v48 = vadd.s32 40, %v3958_v31  ;;  %v1881_v4 = vadd.s32 56, %v3958_v31 }
 0x1c4   : > { %v4029_v40 = vmul.u32.u64.low 3435973837, %v1878_v37  ;;  %v4030_v10 = vmul.u32.u64.high 3435973837, %v1878_v37, %v4029_v40 }
 0x1c5   : > { %v2142_v42 = vadd.f32 %v2133_v27, %v2132_v50 }
 0x1c6   : > { %v1934_v23 = vshrl.u32 %v4030_v10, 3 }
 0x1d3   : > { %v1290_v59 = vpop.f32.mrf.mxu1 }
 0x1d4   : > { %v1291_v14 = vadd.f32 %v1290_v59, %v3968_v55  ;;  %v1883_v59 = vadd.s32 72, %v3958_v31 }
 0x1d5   : > { %v2491_v28 = vpop.f32.mrf.mxu1 }
 0x1d6   : > { %v1935_v28 = vmul.u32 10, %v1934_v23 }
 0x1d7   : > { %v1293_v51 = vpop.f32.mrf.mxu1 }
 0x1d8   : > { %v1294_v29 = vadd.f32 %v1293_v51, %v3973_v7 }
 0x1d9   : > { %v2492_v49 = vpop.f32.mrf.mxu1 }
 0x1da   : > { %v1781_v20 = vpop.f32.mrf.mxu0 }
 0x1db   : > { %v1814_v63 = vadd.f32 %v1781_v20, %v1291_v14 }
 0x1dc   : > { %v2517_v12 = vpop.f32.mrf.mxu0 }
 0x1dd   : > { %v2106_v17 = vmul.f32 %v2386_v47, %v1814_v63  ;;  %v1936_v12 = vsub.s32 %v1878_v37, %v1935_v28 }
 0x1de   : > { %v1784_v0 = vpop.f32.mrf.mxu0 }
 0x1df   : > { %v2115_v8 = vadd.f32 %v2114_v1, %v2106_v17  ;;  %v2134_v44 = vmul.f32 %v2106_v17, %v1814_v63  ;;  %v1815_v6 = vadd.f32 %v1784_v0, %v1294_v29  ;;  %vm1998_vm10 = vcmp.ne.s32.totalorder %v1936_v12, 0 }
 0x1e0   : > { %v2518_v55 = vpop.f32.mrf.mxu0  ;;  %v4040_v1 = vmul.u32.u64.low 3435973837, %v1881_v4  ;;  %v4041_v27 = vmul.u32.u64.high 3435973837, %v1881_v4, %v4040_v1  ;;  %vm2008_vm12 = vcmp.lt.s32.totalorder %v1936_v12, 0 }
 0x1e1   : > { %v2143_v58 = vadd.f32 %v2142_v42, %v2134_v44  ;;  %v2414_v57 = vpack.c.bf16 %v1815_v6, %v1814_v63  ;;  %v2107_v45 = vmul.f32 %v2387_v5, %v1815_v6  ;;  %v1882_v42 = vadd.s32 64, %v3958_v31  ;;  %vm4064_vm15 = vmand %vm2008_vm12, %vm1998_vm10 }
 0x1e2   : > { %v1967_v49 = vshrl.u32 %v4041_v27, 3  ;;  %v4052_v47 = vmul.u32.u64.low 3435973837, %v1883_v59  ;;  %v4053_v63 = vmul.u32.u64.high 3435973837, %v1883_v59, %v4052_v47 }
 0x1e3   : > { %2426 = vst [vmem:[%s3899_s14 + $0x8] sm:$0xff] %v2414_v57   ;;  %v4014_v61 = vadd.f32 %v2115_v8, %v2107_v45  ;;  %v2135_v43 = vmul.f32 %v2107_v45, %v1815_v6  ;;  %v4046_v52 = vmul.u32.u64.low 3435973837, %v1882_v42  ;;  %v4047_v24 = vmul.u32.u64.high 3435973837, %v1882_v42, %v4046_v52 }
 0x1e5   : > { %v4016_v3 = vadd.f32 %v2143_v58, %v2135_v43  ;;  %v1978_v58 = vshrl.u32 %v4047_v24, 3 }
 0x1f3   : > { %v1298_v35 = vpop.f32.mrf.mxu1 }
 0x1f4   : > { %v1299_v56 = vadd.f32 %v1298_v35, %v3926_v62  ;;  %v1880_v62 = vadd.s32 48, %v3958_v31  ;;  %v1968_v31 = vmul.u32 10, %v1967_v49 }
 0x1f5   : > { %v2495_v7 = vpop.f32.mrf.mxu1 }
 0x1f6   : > { %v4037_v2 = vmul.u32.u64.low 3435973837, %v1880_v62  ;;  %v4038_v50 = vmul.u32.u64.high 3435973837, %v1880_v62, %v4037_v2  ;;  %v1969_v43 = vsub.s32 %v1881_v4, %v1968_v31 }
 0x1f7   : > { %v1301_v32 = vpop.f32.mrf.mxu1 }
 0x1f8   : > { %v1302_v41 = vadd.f32 %v1301_v32, %v3928_v13  ;;  %v4033_v13 = vmul.u32.u64.low 3435973837, %v1879_v48  ;;  %v4034_v39 = vmul.u32.u64.high 3435973837, %v1879_v48, %v4033_v13  ;;  %v1956_v53 = vshrl.u32 %v4038_v50, 3 }
 0x1f9   : > { %v2496_v16 = vpop.f32.mrf.mxu1  ;;  %v1979_v32 = vmul.u32 10, %v1978_v58  ;;  %vm2001_vm2 = vcmp.ne.s32.totalorder %v1969_v43, 0  ;;  %vm2011_vm4 = vcmp.lt.s32.totalorder %v1969_v43, 0 }
 0x1fa   : > { %v1789_v22 = vpop.f32.mrf.mxu0  ;;  %v1945_v36 = vshrl.u32 %v4034_v39, 3  ;;  %v1957_v29 = vmul.u32 10, %v1956_v53  ;;  %v1989_v16 = vshrl.u32 %v4053_v63, 3  ;;  %vm2021_vm7 = vmand %vm2011_vm4, %vm2001_vm2 }
 0x1fb   : > { %v4020_v38 = vadd.f32 %v1789_v22, %v1299_v56 }
 0x1fc   : > { %v2521_v30 = vpop.f32.mrf.mxu0  ;;  %v1946_v51 = vmul.u32 10, %v1945_v36  ;;  %v1958_v57 = vsub.s32 %v1880_v62, %v1957_v29 }
 0x1fe   : > { %v1792_v9 = vpop.f32.mrf.mxu0  ;;  %v1947_v0 = vsub.s32 %v1879_v48, %v1946_v51  ;;  %vm2000_vm3 = vcmp.ne.s32.totalorder %v1958_v57, 0  ;;  %vm2010_vm6 = vcmp.lt.s32.totalorder %v1958_v57, 0  ;;  %v2030_v30 = vadd.s32 10, %v1958_v57 }
 0x1ff   : > { %v4022_v46 = vadd.f32 %v1792_v9, %v1302_v41  ;;  %vm2020_vm5 = vmand %vm2010_vm6, %vm2000_vm3  ;;  %v2031_v41 = vadd.s32 10, %v1969_v43  ;;  %v1980_v9 = vsub.s32 %v1882_v42, %v1979_v32 }
 0x200   : > { %v2522_v54 = vpop.f32.mrf.mxu0  ;;  %vm1999_vm13 = vcmp.ne.s32.totalorder %v1947_v0, 0  ;;  %vm2009_vm14 = vcmp.lt.s32.totalorder %v1947_v0, 0  ;;  %v2029_v7 = vadd.s32 10, %v1947_v0 }
 0x201   : > { %v2419_v21 = vpack.c.bf16 %v4022_v46, %v4020_v38  ;;  %vm2019_vm0 = vmand %vm2009_vm14, %vm1999_vm13  ;;  %v1990_v54 = vmul.u32 10, %v1989_v16  ;;  %v2041_v37 = vsel %vm2021_vm7, %v2031_v41, %v1969_v43  ;;  %vm2002_vm10 = vcmp.ne.s32.totalorder %v1980_v9, 0 }
 0x202   : > { %v2039_v56 = vsel %vm2019_vm0, %v2029_v7, %v1947_v0  ;;  %vm2012_vm12 = vcmp.lt.s32.totalorder %v1980_v9, 0  ;;  %v2032_v40 = vadd.s32 10, %v1980_v9  ;;  %vm2064_vm0 = vcmp.lt.s32.totalorder %v2041_v37, 8 }
 0x203   : > { %2427 = vst [vmem:[%s3899_s14 + $0x10] sm:$0xff] %v2419_v21   ;;  %vm2062_vm9 = vcmp.lt.s32.totalorder %v2039_v56, 8  ;;  %v2040_v21 = vsel %vm2020_vm5, %v2030_v30, %v1958_v57  ;;  %v1991_v48 = vsub.s32 %v1883_v59, %v1990_v54  ;;  %vm2022_vm3 = vmand %vm2012_vm12, %vm2002_vm10 }
 0x204   : > { %vm2079_vm14 = vmand %vm2062_vm9, %vm2073_vm11  ;;  %v2042_v13 = vsel %vm2022_vm3, %v2032_v40, %v1980_v9 }
 0x205   : > { %vm2003_vm6 = vcmp.ne.s32.totalorder %v1991_v48, 0  ;;  %vm2013_vm2 = vcmp.lt.s32.totalorder %v1991_v48, 0  ;;  %v2389_v62 = vsel %vm2079_vm14, 1.0, %v2647_v18  ;;  %vm2081_vm5 = vmand %vm2064_vm0, %vm2073_vm11  ;;  %v2033_v39 = vadd.s32 10, %v1991_v48 }
 0x206   : > { %vm4083_vm7 = vmand %vm2013_vm2, %vm2003_vm6  ;;  %v2109_v27 = vmul.f32 %v2389_v62, %v4022_v46 }
 0x207   : > { %v2043_v23 = vsel %vm4083_vm7, %v2033_v39, %v1991_v48 }
 0x208   : > { %v2137_v59 = vmul.f32 %v2109_v27, %v4022_v46  ;;  %vm2066_vm10 = vcmp.lt.s32.totalorder %v2043_v23, 8 }
 0x209   : > { %vm2083_vm12 = vmand %vm2066_vm10, %vm2073_vm11 }
 0x213   : > { %v1306_v19 = vpop.f32.mrf.mxu1 }
 0x214   : > { %v1307_v5 = vadd.f32 %v1306_v19, %v3943_v33  ;;  %v2391_v19 = vsel %vm2081_vm5, 1.0, %v2647_v18 }
 0x215   : > { %v2499_v15 = vpop.f32.mrf.mxu1 }
 0x217   : > { %v1309_v60 = vpop.f32.mrf.mxu1 }
 0x218   : > { %v1310_v8 = vadd.f32 %v1309_v60, %v3950_v25  ;;  %v2028_v25 = vadd.s32 10, %v1936_v12 }
 0x219   : > { %v2500_v14 = vpop.f32.mrf.mxu1 }
 0x21a   : > { %v1797_v20 = vpop.f32.mrf.mxu0  ;;  %v2038_v22 = vsel %vm4064_vm15, %v2028_v25, %v1936_v12  ;;  %vm2063_vm15 = vcmp.lt.s32.totalorder %v2040_v21, 8 }
 0x21b   : > { %v4057_v6 = vadd.f32 %v1797_v20, %v1307_v5  ;;  %vm2061_vm8 = vcmp.lt.s32.totalorder %v2038_v22, 8  ;;  %vm2080_vm4 = vmand %vm2063_vm15, %vm2073_vm11 }
 0x21c   : > { %v2525_v17 = vpop.f32.mrf.mxu0  ;;  %vm2078_vm13 = vmand %vm2061_vm8, %vm2073_vm11  ;;  %v2390_v50 = vsel %vm2080_vm4, 1.0, %v2647_v18  ;;  %vm2065_vm8 = vcmp.lt.s32.totalorder %v2042_v13, 8 }
 0x21d   : > { %v2388_v10 = vsel %vm2078_vm13, 1.0, %v2647_v18  ;;  %v2110_v15 = vmul.f32 %v2390_v50, %v4057_v6  ;;  %vm2082_vm9 = vmand %vm2065_vm8, %vm2073_vm11 }
 0x21e   : > { %v1800_v44 = vpop.f32.mrf.mxu0  ;;  %v2108_v4 = vmul.f32 %v2388_v10, %v4020_v38  ;;  %v2392_v20 = vsel %vm2082_vm9, 1.0, %v2647_v18 }
 0x21f   : > { %v4059_v55 = vadd.f32 %v1800_v44, %v1310_v8  ;;  %v2393_v44 = vsel %vm2083_vm12, 1.0, %v2647_v18 }
 0x220   : > { %v2526_v45 = vpop.f32.mrf.mxu0  ;;  %v2136_v36 = vmul.f32 %v2108_v4, %v4020_v38  ;;  %v2117_v24 = vadd.f32 %v4014_v61, %v2108_v4 }
 0x221   : > { %v2424_v33 = vpack.c.bf16 %v4059_v55, %v4057_v6  ;;  %v2111_v28 = vmul.f32 %v2391_v19, %v4059_v55 }
 0x222   : > { %v2145_v38 = vadd.f32 %v4016_v3, %v2136_v36  ;;  %v2118_v49 = vadd.f32 %v2117_v24, %v2109_v27 }
 0x223   : > { %2428 = vst [vmem:[%s3899_s14 + $0x18] sm:$0xff] %v2424_v33   ;;  %v2139_v17 = vmul.f32 %v2111_v28, %v4059_v55 }
 0x224   : > { %v2146_v46 = vadd.f32 %v2145_v38, %v2137_v59  ;;  %v2119_v29 = vadd.f32 %v2118_v49, %v2110_v15 }
 0x226   : > { %v2120_v8 = vadd.f32 %v2119_v29, %v2111_v28 }
 0x233   : > { %v1314_v1 = vpop.f32.mrf.mxu1 }
 0x234   : > { %v1315_v60 = vadd.f32 %v1314_v1, %v3956_v26  ;;  %v2138_v26 = vmul.f32 %v2110_v15, %v4057_v6 }
 0x235   : > { %v2503_v42 = vpop.f32.mrf.mxu1 }
 0x236   : > { %v2147_v5 = vadd.f32 %v2146_v46, %v2138_v26 }
 0x237   : > { %v1317_v52 = vpop.f32.mrf.mxu1 }
 0x238   : > { %v1805_v53 = vpop.f32.mrf.mxu0  ;;  %v1318_v63 = vadd.f32 %v1317_v52, %v3960_v11  ;;  %v2148_v57 = vadd.f32 %v2147_v5, %v2139_v17 }
 0x239   : > { %v1820_v51 = vadd.f32 %v1805_v53, %v1315_v60  ;;  %v2504_v14 = vpop.f32.mrf.mxu1 }
 0x23a   : > { %v2529_v47 = vpop.f32.mrf.mxu0 }
 0x23b   : > { %v2404_v61 = vpack.c.bf16 %v1820_v51, %v1820_v51  ;;  %v2112_v12 = vmul.f32 %v2392_v20, %v1820_v51 }
 0x23c   : > { %v1808_v0 = vpop.f32.mrf.mxu0 }
 0x23d   : > { %1870 = vst [vmem:[%s3899_s14 + $0x20] sm:$0xf] %v2404_v61  ;;  %v1821_v3 = vadd.f32 %v1808_v0, %v1318_v63  ;;  %v2140_v31 = vmul.f32 %v2112_v12, %v1820_v51  ;;  %v2121_v45 = vadd.f32 %v2120_v8, %v2112_v12 }
 0x23e   : > { %v2530_v6 = vpop.f32.mrf.mxu0 }
 0x23f   : > { %v2405_v11 = vpack.c.bf16 %v1821_v3, %v1821_v3  ;;  %v2113_v58 = vmul.f32 %v2393_v44, %v1821_v3  ;;  %v2149_v43 = vadd.f32 %v2148_v57, %v2140_v31 }
 0x241   : > { %1871 = vst [vmem:[%s3899_s14 + $0x24] sm:$0x7] %v2405_v11  ;;  %v2123_v34 = vsel %vm521_vm1, %v2113_v58, 0.0  ;;  %v2141_v33 = vmul.f32 %v2113_v58, %v1821_v3 }
 0x242   : > { %v2124_v55 = vadd.f32 %v2123_v34, %v2121_v45 }
 0x243   : > { %v2150_v25 = vsel %vm521_vm1, %v2141_v33, 0.0 }
 0x244   : > { %v2125_v35 = vrot.slane %v2124_v55, 4  ;;  %v2151_v7 = vadd.f32 %v2150_v25, %v2149_v43 }
 0x246   : > { %v2126_v32 = vadd.f32 %v2125_v35, %v2124_v55  ;;  %v2152_v16 = vrot.slane %v2151_v7, 4 }
 0x248   : > { %v2127_v18 = vrot.slane %v2126_v32, 2  ;;  %v2153_v22 = vadd.f32 %v2152_v16, %v2151_v7 }
 0x24a   : > { %v2128_v30 = vadd.f32 %v2127_v18, %v2126_v32  ;;  %v2154_v56 = vrot.slane %v2153_v22, 2 }
 0x24c   : > { %v2129_v41 = vrot.slane %v2128_v30, 1  ;;  %v2155_v9 = vadd.f32 %v2154_v56, %v2153_v22 }
 0x24e   : > { %v2130_v54 = vadd.f32 %v2129_v41, %v2128_v30  ;;  %v2156_v21 = vrot.slane %v2155_v9, 1 }
 0x250   : > { %2131 = vst [vmem:[%s319_s17] sm:$0x1] %v2130_v54  ;;  %v2157_v37 = vadd.f32 %v2156_v21, %v2155_v9 }
 0x252   : > { %2158 = vst [vmem:[%s322_s25] sm:$0x1] %v2157_v37 }
 0x253 PF: > { %s17_s21 = sadd.s32 1, %s2637_s21  }
 0x254   : > { %p14_p12 = scmp.ge.s32.totalorder %s17_s21, 22  }
 0x256   :  { %16 = sbr.rel (!%p14_p12) target bundleno = 1 (0x1), region = 98 }

</bundles_post_ra>
